<compile_context>
chip_gen: v6e
topology: v6e:2x2x1
jax: 0.10.0
libtpu: 0.0.40
codegen_flags: <defaults>
</compile_context>

<pallas_src>
import jax
import jax.numpy as jnp
from jax.experimental import pallas as pl
from jax.experimental.pallas import tpu as pltpu


# ------------------------------ fused kernel --------------------------------

def down_block_kernel(xp_ref, w1_ref, s1_ref, b1_ref, w2_ref, s2_ref, b2_ref,
                      o_ref, a1_ref, a2_ref):
    # xp_ref : (1, Ho, 2, Wo, 2*Cin)  pool-view of the NHWC input tile
    # w*_ref : (3, 3, Cin, Cout)      bf16 HWIO weights
    # s*/b*  : (1, Cout)              f32 folded conv-bias + eval-mode BN
    # o_ref  : (1, Ho*Wo, Cout)       f32 output slab
    # a1_ref : (Ho+2, Wo+2, Cin)      f32 scratch, zero halo (conv1 input)
    # a2_ref : (Ho+2, Wo+2, Cmid)     f32 scratch, zero halo (conv2 input)
    Ho, Wo = xp_ref.shape[1], xp_ref.shape[3]
    Cin = xp_ref.shape[4] // 2
    Cmid = w1_ref.shape[3]

    # ---- 2x2 max pool: H-pairs via the split axis, W-pairs via lane halves ----
    top = xp_ref[0, :, 0, :, :]                      # rows 2i   -> (Ho, Wo, 2*Cin)
    bot = xp_ref[0, :, 1, :, :]                      # rows 2i+1 -> (Ho, Wo, 2*Cin)
    m = jnp.maximum(top, bot)
    pooled = jnp.maximum(m[:, :, :Cin], m[:, :, Cin:])   # (Ho, Wo, Cin)

    def conv_bn_relu(a_ref, w_ref, scale, bias):
        cin, cout = w_ref.shape[2], w_ref.shape[3]
        acc = jnp.zeros((Ho * Wo, cout), jnp.float32)
        for dh in range(3):                          # 9 shifted-patch MXU dots
            for dw in range(3):
                patch = a_ref[dh:dh + Ho, dw:dw + Wo, :].reshape(Ho * Wo, cin)
                acc = acc + jnp.dot(patch.astype(jnp.bfloat16), w_ref[dh, dw],
                                    preferred_element_type=jnp.float32)
        return jnp.maximum(acc * scale + bias, 0.0)  # (Ho*Wo, cout) f32

    # ---- conv1 + BN + ReLU (zero halo held in VMEM scratch) ----
    a1_ref[...] = jnp.zeros(a1_ref.shape, a1_ref.dtype)
    a1_ref[1:Ho + 1, 1:Wo + 1, :] = pooled
    y1 = conv_bn_relu(a1_ref, w1_ref, s1_ref[...], b1_ref[...])

    # ---- conv2 + BN + ReLU ----
    a2_ref[...] = jnp.zeros(a2_ref.shape, a2_ref.dtype)
    a2_ref[1:Ho + 1, 1:Wo + 1, :] = y1.reshape(Ho, Wo, Cmid)
    y2 = conv_bn_relu(a2_ref, w2_ref, s2_ref[...], b2_ref[...])

    o_ref[0] = y2                                    # (Ho*Wo, Cout)


# ------------------------------ JAX wrapper ----------------------------------

def _fold_bn(conv_b, gamma, beta, mean, var, eps=1e-5):
    inv = gamma * jax.lax.rsqrt(var + eps)
    scale = inv
    bias = (conv_b - mean) * inv + beta
    return scale.astype(jnp.float32), bias.astype(jnp.float32)


def down_block_forward(x_nchw, p, eps=1e-5):
    x = jnp.transpose(x_nchw, (0, 2, 3, 1)).astype(jnp.float32)   # NCHW -> NHWC
    N, H, W, Cin = x.shape
    # Down_Block.pad(): right/bottom zero-pad to even H/W (static shapes)
    if H % 2 != 0:
        x = jnp.pad(x, ((0, 0), (0, 1), (0, 0), (0, 0)))
    if W % 2 != 0:
        x = jnp.pad(x, ((0, 0), (0, 0), (0, 1), (0, 0)))
    H, W = x.shape[1], x.shape[2]
    Ho, Wo = H // 2, W // 2

    Cmid = p["w1"].shape[-1]
    Cout = p["w2"].shape[-1]

    xp = x.reshape(N, Ho, 2, Wo, 2 * Cin)     # contiguous (free) pool view

    s1, b1 = _fold_bn(p["b1"], p["g1"], p["be1"], p["m1"], p["v1"], eps)
    s2, b2 = _fold_bn(p["b2"], p["g2"], p["be2"], p["m2"], p["v2"], eps)
    w1 = p["w1"].astype(jnp.bfloat16)
    w2 = p["w2"].astype(jnp.bfloat16)

    out = pl.pallas_call(
        down_block_kernel,
        out_shape=jax.ShapeDtypeStruct((N, Ho * Wo, Cout), jnp.float32),
        grid=(N,),
        in_specs=[
            pl.BlockSpec((1, Ho, 2, Wo, 2 * Cin), lambda n: (n, 0, 0, 0, 0)),
            pl.BlockSpec((3, 3, Cin, Cmid), lambda n: (0, 0, 0, 0)),
            pl.BlockSpec((1, Cmid), lambda n: (0, 0)),
            pl.BlockSpec((1, Cmid), lambda n: (0, 0)),
            pl.BlockSpec((3, 3, Cmid, Cout), lambda n: (0, 0, 0, 0)),
            pl.BlockSpec((1, Cout), lambda n: (0, 0)),
            pl.BlockSpec((1, Cout), lambda n: (0, 0)),
        ],
        out_specs=pl.BlockSpec((1, Ho * Wo, Cout), lambda n: (n, 0, 0)),
        scratch_shapes=[
            pltpu.VMEM((Ho + 2, Wo + 2, Cin), jnp.float32),
            pltpu.VMEM((Ho + 2, Wo + 2, Cmid), jnp.float32),
        ],
        compiler_params=pltpu.CompilerParams(
            dimension_semantics=("parallel",)),
    )(xp, w1, s1.reshape(1, Cmid), b1.reshape(1, Cmid),
      w2, s2.reshape(1, Cout), b2.reshape(1, Cout))

    out = out.reshape(N, Ho, Wo, Cout)
    return jnp.transpose(out, (0, 3, 1, 2))                       # NHWC -> NCHW


# ----------------------- deterministic parameter init -----------------------

def init_params(key, ic, oc):
    ks = jax.random.split(key, 12)
    w1 = jax.random.normal(ks[0], (3, 3, ic, oc), jnp.float32) / (3.0 * jnp.sqrt(ic))
    b1 = 0.1 * jax.random.normal(ks[1], (oc,), jnp.float32)
    w2 = jax.random.normal(ks[2], (3, 3, oc, oc), jnp.float32) / (3.0 * jnp.sqrt(oc))
    b2 = 0.1 * jax.random.normal(ks[3], (oc,), jnp.float32)
    return dict(
        w1=w1, b1=b1,
        g1=1.0 + 0.1 * jax.random.normal(ks[4], (oc,), jnp.float32),
        be1=0.1 * jax.random.normal(ks[5], (oc,), jnp.float32),
        m1=0.1 * jax.random.normal(ks[6], (oc,), jnp.float32),
        v1=0.5 + jax.random.uniform(ks[7], (oc,), jnp.float32),
        w2=w2, b2=b2,
        g2=1.0 + 0.1 * jax.random.normal(ks[8], (oc,), jnp.float32),
        be2=0.1 * jax.random.normal(ks[9], (oc,), jnp.float32),
        m2=0.1 * jax.random.normal(ks[10], (oc,), jnp.float32),
        v2=0.5 + jax.random.uniform(ks[11], (oc,), jnp.float32),
    )


# ------------------------------ pure-JAX ref ---------------------------------

def _ref_cbr(x, w_hwio, b, gamma, beta, mean, var, eps=1e-5):
    w_oihw = jnp.transpose(w_hwio, (3, 2, 0, 1))
    y = jax.lax.conv_general_dilated(
        x, w_oihw, (1, 1), ((1, 1), (1, 1)),
        dimension_numbers=("NCHW", "OIHW", "NCHW"),
        precision=jax.lax.Precision.HIGHEST)
    y = y + b[None, :, None, None]
    y = (y - mean[None, :, None, None]) * jax.lax.rsqrt(var[None, :, None, None] + eps)
    y = y * gamma[None, :, None, None] + beta[None, :, None, None]
    return jnp.maximum(y, 0.0)


def ref_forward(x, p):
    N, C, H, W = x.shape
    if H % 2:
        x = jnp.pad(x, ((0, 0), (0, 0), (0, 1), (0, 0)))
    if W % 2:
        x = jnp.pad(x, ((0, 0), (0, 0), (0, 0), (0, 1)))
    N, C, H, W = x.shape
    x = x.reshape(N, C, H // 2, 2, W // 2, 2).max(axis=(3, 5))
    x = _ref_cbr(x, p["w1"], p["b1"], p["g1"], p["be1"], p["m1"], p["v1"])
    x = _ref_cbr(x, p["w2"], p["b2"], p["g2"], p["be2"], p["m2"], p["v2"])
    return x


# --------------------------------- main --------------------------------------

if __name__ == "__main__":
    key = jax.random.PRNGKey(0)
    kx, kp = jax.random.split(key)
    ic, oc = 4, 8
    x = jax.random.normal(kx, (2, ic, 16, 16), jnp.float32)   # NCHW, like PyTorch
    params = init_params(kp, ic, oc)

    fwd = jax.jit(down_block_forward)
    out = jax.block_until_ready(fwd(x, params))
    assert out.shape == (2, oc, 8, 8), out.shape

    ref = ref_forward(x, params)
    max_err = float(jnp.max(jnp.abs(out - ref)))
    # bf16 MXU operands with f32 accumulation vs. f32-HIGHEST reference.
    assert max_err < 5e-2, f"mismatch vs reference: max abs err = {max_err}"

    print("KERNEL_OK")
</pallas_src>

<mosaic_0001>
module attributes {stable_mosaic.version = 11 : i64} {
  func.func @down_block_kernel(%arg0: i32, %arg1: memref<1x8x2x8x8xf32, #tpu.memory_space<vmem>>, %arg2: memref<3x3x4x8xbf16, #tpu.memory_space<vmem>>, %arg3: memref<1x8xf32, #tpu.memory_space<vmem>>, %arg4: memref<1x8xf32, #tpu.memory_space<vmem>>, %arg5: memref<3x3x8x8xbf16, #tpu.memory_space<vmem>>, %arg6: memref<1x8xf32, #tpu.memory_space<vmem>>, %arg7: memref<1x8xf32, #tpu.memory_space<vmem>>, %arg8: memref<1x64x8xf32, #tpu.memory_space<vmem>>, %arg9: memref<10x10x4xf32, #tpu.memory_space<vmem>>, %arg10: memref<10x10x8xf32, #tpu.memory_space<vmem>>) attributes {dimension_semantics = [#tpu.dimension_semantics<parallel>], iteration_bounds = array<i64: 2>, scalar_prefetch = 0 : i64, scratch_operands = 2 : i64, tpu.core_type = #tpu.core_type<tc>, window_params = [{transform_indices = @transform_0, window_bounds = array<i64: 1, 8, 2, 8, 8>}, {pipeline_mode = #tpu.pipeline_mode<synchronous>, transform_indices = @transform_1, window_bounds = array<i64: 3, 3, 4, 8>}, {pipeline_mode = #tpu.pipeline_mode<synchronous>, transform_indices = @transform_2, window_bounds = array<i64: 1, 8>}, {pipeline_mode = #tpu.pipeline_mode<synchronous>, transform_indices = @transform_3, window_bounds = array<i64: 1, 8>}, {pipeline_mode = #tpu.pipeline_mode<synchronous>, transform_indices = @transform_4, window_bounds = array<i64: 3, 3, 8, 8>}, {pipeline_mode = #tpu.pipeline_mode<synchronous>, transform_indices = @transform_5, window_bounds = array<i64: 1, 8>}, {pipeline_mode = #tpu.pipeline_mode<synchronous>, transform_indices = @transform_6, window_bounds = array<i64: 1, 8>}, {transform_indices = @transform_7, window_bounds = array<i64: 1, 64, 8>}]} {
    %c0 = arith.constant 0 : index
    %c0_0 = arith.constant 0 : index
    %c0_1 = arith.constant 0 : index
    %c0_2 = arith.constant 0 : index
    %c0_3 = arith.constant 0 : index
    %0 = vector.load %arg1[%c0, %c0_0, %c0_1, %c0_2, %c0_3] : memref<1x8x2x8x8xf32, #tpu.memory_space<vmem>>, vector<1x8x1x8x8xf32>
    %1 = vector.shape_cast %0 : vector<1x8x1x8x8xf32> to vector<8x8x8xf32>
    %c0_4 = arith.constant 0 : index
    %c0_5 = arith.constant 0 : index
    %c1 = arith.constant 1 : index
    %c0_6 = arith.constant 0 : index
    %c0_7 = arith.constant 0 : index
    %2 = vector.load %arg1[%c0_4, %c0_5, %c1, %c0_6, %c0_7] : memref<1x8x2x8x8xf32, #tpu.memory_space<vmem>>, vector<1x8x1x8x8xf32>
    %3 = vector.shape_cast %2 : vector<1x8x1x8x8xf32> to vector<8x8x8xf32>
    %4 = arith.maximumf %1, %3 : vector<8x8x8xf32>
    %5 = vector.extract_strided_slice %4 {offsets = [0, 0, 0], sizes = [8, 8, 4], strides = [1, 1, 1]} : vector<8x8x8xf32> to vector<8x8x4xf32>
    %6 = vector.extract_strided_slice %4 {offsets = [0, 0, 4], sizes = [8, 8, 4], strides = [1, 1, 1]} : vector<8x8x8xf32> to vector<8x8x4xf32>
    %7 = arith.maximumf %5, %6 : vector<8x8x4xf32>
    %cst = arith.constant 0.000000e+00 : f32
    %8 = vector.broadcast %cst : f32 to vector<10x10x4xf32>
    %c0_8 = arith.constant 0 : index
    %c0_9 = arith.constant 0 : index
    %c0_10 = arith.constant 0 : index
    %9 = vector.load %arg9[%c0_8, %c0_9, %c0_10] : memref<10x10x4xf32, #tpu.memory_space<vmem>>, vector<10x10x4xf32>
    tpu.vector_store %arg9[%c0_8, %c0_9, %c0_10], %8 {strides = array<i32>} : memref<10x10x4xf32, #tpu.memory_space<vmem>>, vector<10x10x4xf32>,
    %c1_11 = arith.constant 1 : index
    %c1_12 = arith.constant 1 : index
    %c0_13 = arith.constant 0 : index
    %10 = vector.load %arg9[%c1_11, %c1_12, %c0_13] : memref<10x10x4xf32, #tpu.memory_space<vmem>>, vector<8x8x4xf32>
    tpu.vector_store %arg9[%c1_11, %c1_12, %c0_13], %7 {strides = array<i32>} : memref<10x10x4xf32, #tpu.memory_space<vmem>>, vector<8x8x4xf32>,
    %c0_14 = arith.constant 0 : index
    %c0_15 = arith.constant 0 : index
    %11 = vector.load %arg3[%c0_14, %c0_15] : memref<1x8xf32, #tpu.memory_space<vmem>>, vector<1x8xf32>
    %c0_16 = arith.constant 0 : index
    %c0_17 = arith.constant 0 : index
    %12 = vector.load %arg4[%c0_16, %c0_17] : memref<1x8xf32, #tpu.memory_space<vmem>>, vector<1x8xf32>
    %cst_18 = arith.constant 0.000000e+00 : f32
    %13 = vector.broadcast %cst_18 : f32 to vector<64x8xf32>
    %c0_19 = arith.constant 0 : index
    %c0_20 = arith.constant 0 : index
    %c0_21 = arith.constant 0 : index
    %14 = vector.load %arg9[%c0_19, %c0_20, %c0_21] : memref<10x10x4xf32, #tpu.memory_space<vmem>>, vector<8x8x4xf32>
    %15 = vector.shape_cast %14 : vector<8x8x4xf32> to vector<64x4xf32>
    %16 = arith.truncf %15 : vector<64x4xf32> to vector<64x4xbf16>
    %c0_22 = arith.constant 0 : index
    %c0_23 = arith.constant 0 : index
    %c0_24 = arith.constant 0 : index
    %c0_25 = arith.constant 0 : index
    %17 = vector.load %arg2[%c0_22, %c0_23, %c0_24, %c0_25] : memref<3x3x4x8xbf16, #tpu.memory_space<vmem>>, vector<1x1x4x8xbf16>
    %18 = vector.shape_cast %17 : vector<1x1x4x8xbf16> to vector<4x8xbf16>
    %cst_26 = arith.constant dense<0.000000e+00> : vector<64x8xf32>
    %19 = tpu.matmul %16, %18, %cst_26 {dimension_numbers = #tpu.dot_dimension_numbers<[1], [0], [0], [1], [0, 0, 1, 1], [], []>} : vector<64x4xbf16>, vector<4x8xbf16>, vector<64x8xf32> -> vector<64x8xf32>
    %20 = arith.addf %13, %19 : vector<64x8xf32>
    %c0_27 = arith.constant 0 : index
    %c1_28 = arith.constant 1 : index
    %c0_29 = arith.constant 0 : index
    %21 = vector.load %arg9[%c0_27, %c1_28, %c0_29] : memref<10x10x4xf32, #tpu.memory_space<vmem>>, vector<8x8x4xf32>
    %22 = vector.shape_cast %21 : vector<8x8x4xf32> to vector<64x4xf32>
    %23 = arith.truncf %22 : vector<64x4xf32> to vector<64x4xbf16>
    %c0_30 = arith.constant 0 : index
    %c1_31 = arith.constant 1 : index
    %c0_32 = arith.constant 0 : index
    %c0_33 = arith.constant 0 : index
    %24 = vector.load %arg2[%c0_30, %c1_31, %c0_32, %c0_33] : memref<3x3x4x8xbf16, #tpu.memory_space<vmem>>, vector<1x1x4x8xbf16>
    %25 = vector.shape_cast %24 : vector<1x1x4x8xbf16> to vector<4x8xbf16>
    %cst_34 = arith.constant dense<0.000000e+00> : vector<64x8xf32>
    %26 = tpu.matmul %23, %25, %cst_34 {dimension_numbers = #tpu.dot_dimension_numbers<[1], [0], [0], [1], [0, 0, 1, 1], [], []>} : vector<64x4xbf16>, vector<4x8xbf16>, vector<64x8xf32> -> vector<64x8xf32>
    %27 = arith.addf %20, %26 : vector<64x8xf32>
    %c0_35 = arith.constant 0 : index
    %c2 = arith.constant 2 : index
    %c0_36 = arith.constant 0 : index
    %28 = vector.load %arg9[%c0_35, %c2, %c0_36] : memref<10x10x4xf32, #tpu.memory_space<vmem>>, vector<8x8x4xf32>
    %29 = vector.shape_cast %28 : vector<8x8x4xf32> to vector<64x4xf32>
    %30 = arith.truncf %29 : vector<64x4xf32> to vector<64x4xbf16>
    %c0_37 = arith.constant 0 : index
    %c2_38 = arith.constant 2 : index
    %c0_39 = arith.constant 0 : index
    %c0_40 = arith.constant 0 : index
    %31 = vector.load %arg2[%c0_37, %c2_38, %c0_39, %c0_40] : memref<3x3x4x8xbf16, #tpu.memory_space<vmem>>, vector<1x1x4x8xbf16>
    %32 = vector.shape_cast %31 : vector<1x1x4x8xbf16> to vector<4x8xbf16>
    %cst_41 = arith.constant dense<0.000000e+00> : vector<64x8xf32>
    %33 = tpu.matmul %30, %32, %cst_41 {dimension_numbers = #tpu.dot_dimension_numbers<[1], [0], [0], [1], [0, 0, 1, 1], [], []>} : vector<64x4xbf16>, vector<4x8xbf16>, vector<64x8xf32> -> vector<64x8xf32>
    %34 = arith.addf %27, %33 : vector<64x8xf32>
    %c1_42 = arith.constant 1 : index
    %c0_43 = arith.constant 0 : index
    %c0_44 = arith.constant 0 : index
    %35 = vector.load %arg9[%c1_42, %c0_43, %c0_44] : memref<10x10x4xf32, #tpu.memory_space<vmem>>, vector<8x8x4xf32>
    %36 = vector.shape_cast %35 : vector<8x8x4xf32> to vector<64x4xf32>
    %37 = arith.truncf %36 : vector<64x4xf32> to vector<64x4xbf16>
    %c1_45 = arith.constant 1 : index
    %c0_46 = arith.constant 0 : index
    %c0_47 = arith.constant 0 : index
    %c0_48 = arith.constant 0 : index
    %38 = vector.load %arg2[%c1_45, %c0_46, %c0_47, %c0_48] : memref<3x3x4x8xbf16, #tpu.memory_space<vmem>>, vector<1x1x4x8xbf16>
    %39 = vector.shape_cast %38 : vector<1x1x4x8xbf16> to vector<4x8xbf16>
    %cst_49 = arith.constant dense<0.000000e+00> : vector<64x8xf32>
    %40 = tpu.matmul %37, %39, %cst_49 {dimension_numbers = #tpu.dot_dimension_numbers<[1], [0], [0], [1], [0, 0, 1, 1], [], []>} : vector<64x4xbf16>, vector<4x8xbf16>, vector<64x8xf32> -> vector<64x8xf32>
    %41 = arith.addf %34, %40 : vector<64x8xf32>
    %c1_50 = arith.constant 1 : index
    %c1_51 = arith.constant 1 : index
    %c0_52 = arith.constant 0 : index
    %42 = vector.load %arg9[%c1_50, %c1_51, %c0_52] : memref<10x10x4xf32, #tpu.memory_space<vmem>>, vector<8x8x4xf32>
    %43 = vector.shape_cast %42 : vector<8x8x4xf32> to vector<64x4xf32>
    %44 = arith.truncf %43 : vector<64x4xf32> to vector<64x4xbf16>
    %c1_53 = arith.constant 1 : index
    %c1_54 = arith.constant 1 : index
    %c0_55 = arith.constant 0 : index
    %c0_56 = arith.constant 0 : index
    %45 = vector.load %arg2[%c1_53, %c1_54, %c0_55, %c0_56] : memref<3x3x4x8xbf16, #tpu.memory_space<vmem>>, vector<1x1x4x8xbf16>
    %46 = vector.shape_cast %45 : vector<1x1x4x8xbf16> to vector<4x8xbf16>
    %cst_57 = arith.constant dense<0.000000e+00> : vector<64x8xf32>
    %47 = tpu.matmul %44, %46, %cst_57 {dimension_numbers = #tpu.dot_dimension_numbers<[1], [0], [0], [1], [0, 0, 1, 1], [], []>} : vector<64x4xbf16>, vector<4x8xbf16>, vector<64x8xf32> -> vector<64x8xf32>
    %48 = arith.addf %41, %47 : vector<64x8xf32>
    %c1_58 = arith.constant 1 : index
    %c2_59 = arith.constant 2 : index
    %c0_60 = arith.constant 0 : index
    %49 = vector.load %arg9[%c1_58, %c2_59, %c0_60] : memref<10x10x4xf32, #tpu.memory_space<vmem>>, vector<8x8x4xf32>
    %50 = vector.shape_cast %49 : vector<8x8x4xf32> to vector<64x4xf32>
    %51 = arith.truncf %50 : vector<64x4xf32> to vector<64x4xbf16>
    %c1_61 = arith.constant 1 : index
    %c2_62 = arith.constant 2 : index
    %c0_63 = arith.constant 0 : index
    %c0_64 = arith.constant 0 : index
    %52 = vector.load %arg2[%c1_61, %c2_62, %c0_63, %c0_64] : memref<3x3x4x8xbf16, #tpu.memory_space<vmem>>, vector<1x1x4x8xbf16>
    %53 = vector.shape_cast %52 : vector<1x1x4x8xbf16> to vector<4x8xbf16>
    %cst_65 = arith.constant dense<0.000000e+00> : vector<64x8xf32>
    %54 = tpu.matmul %51, %53, %cst_65 {dimension_numbers = #tpu.dot_dimension_numbers<[1], [0], [0], [1], [0, 0, 1, 1], [], []>} : vector<64x4xbf16>, vector<4x8xbf16>, vector<64x8xf32> -> vector<64x8xf32>
    %55 = arith.addf %48, %54 : vector<64x8xf32>
    %c2_66 = arith.constant 2 : index
    %c0_67 = arith.constant 0 : index
    %c0_68 = arith.constant 0 : index
    %56 = vector.load %arg9[%c2_66, %c0_67, %c0_68] : memref<10x10x4xf32, #tpu.memory_space<vmem>>, vector<8x8x4xf32>
    %57 = vector.shape_cast %56 : vector<8x8x4xf32> to vector<64x4xf32>
    %58 = arith.truncf %57 : vector<64x4xf32> to vector<64x4xbf16>
    %c2_69 = arith.constant 2 : index
    %c0_70 = arith.constant 0 : index
    %c0_71 = arith.constant 0 : index
    %c0_72 = arith.constant 0 : index
    %59 = vector.load %arg2[%c2_69, %c0_70, %c0_71, %c0_72] : memref<3x3x4x8xbf16, #tpu.memory_space<vmem>>, vector<1x1x4x8xbf16>
    %60 = vector.shape_cast %59 : vector<1x1x4x8xbf16> to vector<4x8xbf16>
    %cst_73 = arith.constant dense<0.000000e+00> : vector<64x8xf32>
    %61 = tpu.matmul %58, %60, %cst_73 {dimension_numbers = #tpu.dot_dimension_numbers<[1], [0], [0], [1], [0, 0, 1, 1], [], []>} : vector<64x4xbf16>, vector<4x8xbf16>, vector<64x8xf32> -> vector<64x8xf32>
    %62 = arith.addf %55, %61 : vector<64x8xf32>
    %c2_74 = arith.constant 2 : index
    %c1_75 = arith.constant 1 : index
    %c0_76 = arith.constant 0 : index
    %63 = vector.load %arg9[%c2_74, %c1_75, %c0_76] : memref<10x10x4xf32, #tpu.memory_space<vmem>>, vector<8x8x4xf32>
    %64 = vector.shape_cast %63 : vector<8x8x4xf32> to vector<64x4xf32>
    %65 = arith.truncf %64 : vector<64x4xf32> to vector<64x4xbf16>
    %c2_77 = arith.constant 2 : index
    %c1_78 = arith.constant 1 : index
    %c0_79 = arith.constant 0 : index
    %c0_80 = arith.constant 0 : index
    %66 = vector.load %arg2[%c2_77, %c1_78, %c0_79, %c0_80] : memref<3x3x4x8xbf16, #tpu.memory_space<vmem>>, vector<1x1x4x8xbf16>
    %67 = vector.shape_cast %66 : vector<1x1x4x8xbf16> to vector<4x8xbf16>
    %cst_81 = arith.constant dense<0.000000e+00> : vector<64x8xf32>
    %68 = tpu.matmul %65, %67, %cst_81 {dimension_numbers = #tpu.dot_dimension_numbers<[1], [0], [0], [1], [0, 0, 1, 1], [], []>} : vector<64x4xbf16>, vector<4x8xbf16>, vector<64x8xf32> -> vector<64x8xf32>
    %69 = arith.addf %62, %68 : vector<64x8xf32>
    %c2_82 = arith.constant 2 : index
    %c2_83 = arith.constant 2 : index
    %c0_84 = arith.constant 0 : index
    %70 = vector.load %arg9[%c2_82, %c2_83, %c0_84] : memref<10x10x4xf32, #tpu.memory_space<vmem>>, vector<8x8x4xf32>
    %71 = vector.shape_cast %70 : vector<8x8x4xf32> to vector<64x4xf32>
    %72 = arith.truncf %71 : vector<64x4xf32> to vector<64x4xbf16>
    %c2_85 = arith.constant 2 : index
    %c2_86 = arith.constant 2 : index
    %c0_87 = arith.constant 0 : index
    %c0_88 = arith.constant 0 : index
    %73 = vector.load %arg2[%c2_85, %c2_86, %c0_87, %c0_88] : memref<3x3x4x8xbf16, #tpu.memory_space<vmem>>, vector<1x1x4x8xbf16>
    %74 = vector.shape_cast %73 : vector<1x1x4x8xbf16> to vector<4x8xbf16>
    %cst_89 = arith.constant dense<0.000000e+00> : vector<64x8xf32>
    %75 = tpu.matmul %72, %74, %cst_89 {dimension_numbers = #tpu.dot_dimension_numbers<[1], [0], [0], [1], [0, 0, 1, 1], [], []>} : vector<64x4xbf16>, vector<4x8xbf16>, vector<64x8xf32> -> vector<64x8xf32>
    %76 = arith.addf %69, %75 : vector<64x8xf32>
    %77 = vector.broadcast %11 : vector<1x8xf32> to vector<64x8xf32>
    %78 = arith.mulf %76, %77 : vector<64x8xf32>
    %79 = vector.broadcast %12 : vector<1x8xf32> to vector<64x8xf32>
    %80 = arith.addf %78, %79 : vector<64x8xf32>
    %cst_90 = arith.constant 0.000000e+00 : f32
    %81 = vector.broadcast %cst_90 : f32 to vector<64x8xf32>
    %82 = arith.maximumf %80, %81 : vector<64x8xf32>
    %cst_91 = arith.constant 0.000000e+00 : f32
    %83 = vector.broadcast %cst_91 : f32 to vector<10x10x8xf32>
    %c0_92 = arith.constant 0 : index
    %c0_93 = arith.constant 0 : index
    %c0_94 = arith.constant 0 : index
    %84 = vector.load %arg10[%c0_92, %c0_93, %c0_94] : memref<10x10x8xf32, #tpu.memory_space<vmem>>, vector<10x10x8xf32>
    tpu.vector_store %arg10[%c0_92, %c0_93, %c0_94], %83 {strides = array<i32>} : memref<10x10x8xf32, #tpu.memory_space<vmem>>, vector<10x10x8xf32>,
    %85 = vector.shape_cast %82 : vector<64x8xf32> to vector<8x8x8xf32>
    %c1_95 = arith.constant 1 : index
    %c1_96 = arith.constant 1 : index
    %c0_97 = arith.constant 0 : index
    %86 = vector.load %arg10[%c1_95, %c1_96, %c0_97] : memref<10x10x8xf32, #tpu.memory_space<vmem>>, vector<8x8x8xf32>
    tpu.vector_store %arg10[%c1_95, %c1_96, %c0_97], %85 {strides = array<i32>} : memref<10x10x8xf32, #tpu.memory_space<vmem>>, vector<8x8x8xf32>,
    %c0_98 = arith.constant 0 : index
    %c0_99 = arith.constant 0 : index
    %87 = vector.load %arg6[%c0_98, %c0_99] : memref<1x8xf32, #tpu.memory_space<vmem>>, vector<1x8xf32>
    %c0_100 = arith.constant 0 : index
    %c0_101 = arith.constant 0 : index
    %88 = vector.load %arg7[%c0_100, %c0_101] : memref<1x8xf32, #tpu.memory_space<vmem>>, vector<1x8xf32>
    %cst_102 = arith.constant 0.000000e+00 : f32
    %89 = vector.broadcast %cst_102 : f32 to vector<64x8xf32>
    %c0_103 = arith.constant 0 : index
    %c0_104 = arith.constant 0 : index
    %c0_105 = arith.constant 0 : index
    %90 = vector.load %arg10[%c0_103, %c0_104, %c0_105] : memref<10x10x8xf32, #tpu.memory_space<vmem>>, vector<8x8x8xf32>
    %91 = vector.shape_cast %90 : vector<8x8x8xf32> to vector<64x8xf32>
    %92 = arith.truncf %91 : vector<64x8xf32> to vector<64x8xbf16>
    %c0_106 = arith.constant 0 : index
    %c0_107 = arith.constant 0 : index
    %c0_108 = arith.constant 0 : index
    %c0_109 = arith.constant 0 : index
    %93 = vector.load %arg5[%c0_106, %c0_107, %c0_108, %c0_109] : memref<3x3x8x8xbf16, #tpu.memory_space<vmem>>, vector<1x1x8x8xbf16>
    %94 = vector.shape_cast %93 : vector<1x1x8x8xbf16> to vector<8x8xbf16>
    %cst_110 = arith.constant dense<0.000000e+00> : vector<64x8xf32>
    %95 = tpu.matmul %92, %94, %cst_110 {dimension_numbers = #tpu.dot_dimension_numbers<[1], [0], [0], [1], [0, 0, 1, 1], [], []>} : vector<64x8xbf16>, vector<8x8xbf16>, vector<64x8xf32> -> vector<64x8xf32>
    %96 = arith.addf %89, %95 : vector<64x8xf32>
    %c0_111 = arith.constant 0 : index
    %c1_112 = arith.constant 1 : index
    %c0_113 = arith.constant 0 : index
    %97 = vector.load %arg10[%c0_111, %c1_112, %c0_113] : memref<10x10x8xf32, #tpu.memory_space<vmem>>, vector<8x8x8xf32>
    %98 = vector.shape_cast %97 : vector<8x8x8xf32> to vector<64x8xf32>
    %99 = arith.truncf %98 : vector<64x8xf32> to vector<64x8xbf16>
    %c0_114 = arith.constant 0 : index
    %c1_115 = arith.constant 1 : index
    %c0_116 = arith.constant 0 : index
    %c0_117 = arith.constant 0 : index
    %100 = vector.load %arg5[%c0_114, %c1_115, %c0_116, %c0_117] : memref<3x3x8x8xbf16, #tpu.memory_space<vmem>>, vector<1x1x8x8xbf16>
    %101 = vector.shape_cast %100 : vector<1x1x8x8xbf16> to vector<8x8xbf16>
    %cst_118 = arith.constant dense<0.000000e+00> : vector<64x8xf32>
    %102 = tpu.matmul %99, %101, %cst_118 {dimension_numbers = #tpu.dot_dimension_numbers<[1], [0], [0], [1], [0, 0, 1, 1], [], []>} : vector<64x8xbf16>, vector<8x8xbf16>, vector<64x8xf32> -> vector<64x8xf32>
    %103 = arith.addf %96, %102 : vector<64x8xf32>
    %c0_119 = arith.constant 0 : index
    %c2_120 = arith.constant 2 : index
    %c0_121 = arith.constant 0 : index
    %104 = vector.load %arg10[%c0_119, %c2_120, %c0_121] : memref<10x10x8xf32, #tpu.memory_space<vmem>>, vector<8x8x8xf32>
    %105 = vector.shape_cast %104 : vector<8x8x8xf32> to vector<64x8xf32>
    %106 = arith.truncf %105 : vector<64x8xf32> to vector<64x8xbf16>
    %c0_122 = arith.constant 0 : index
    %c2_123 = arith.constant 2 : index
    %c0_124 = arith.constant 0 : index
    %c0_125 = arith.constant 0 : index
    %107 = vector.load %arg5[%c0_122, %c2_123, %c0_124, %c0_125] : memref<3x3x8x8xbf16, #tpu.memory_space<vmem>>, vector<1x1x8x8xbf16>
    %108 = vector.shape_cast %107 : vector<1x1x8x8xbf16> to vector<8x8xbf16>
    %cst_126 = arith.constant dense<0.000000e+00> : vector<64x8xf32>
    %109 = tpu.matmul %106, %108, %cst_126 {dimension_numbers = #tpu.dot_dimension_numbers<[1], [0], [0], [1], [0, 0, 1, 1], [], []>} : vector<64x8xbf16>, vector<8x8xbf16>, vector<64x8xf32> -> vector<64x8xf32>
    %110 = arith.addf %103, %109 : vector<64x8xf32>
    %c1_127 = arith.constant 1 : index
    %c0_128 = arith.constant 0 : index
    %c0_129 = arith.constant 0 : index
    %111 = vector.load %arg10[%c1_127, %c0_128, %c0_129] : memref<10x10x8xf32, #tpu.memory_space<vmem>>, vector<8x8x8xf32>
    %112 = vector.shape_cast %111 : vector<8x8x8xf32> to vector<64x8xf32>
    %113 = arith.truncf %112 : vector<64x8xf32> to vector<64x8xbf16>
    %c1_130 = arith.constant 1 : index
    %c0_131 = arith.constant 0 : index
    %c0_132 = arith.constant 0 : index
    %c0_133 = arith.constant 0 : index
    %114 = vector.load %arg5[%c1_130, %c0_131, %c0_132, %c0_133] : memref<3x3x8x8xbf16, #tpu.memory_space<vmem>>, vector<1x1x8x8xbf16>
    %115 = vector.shape_cast %114 : vector<1x1x8x8xbf16> to vector<8x8xbf16>
    %cst_134 = arith.constant dense<0.000000e+00> : vector<64x8xf32>
    %116 = tpu.matmul %113, %115, %cst_134 {dimension_numbers = #tpu.dot_dimension_numbers<[1], [0], [0], [1], [0, 0, 1, 1], [], []>} : vector<64x8xbf16>, vector<8x8xbf16>, vector<64x8xf32> -> vector<64x8xf32>
    %117 = arith.addf %110, %116 : vector<64x8xf32>
    %c1_135 = arith.constant 1 : index
    %c1_136 = arith.constant 1 : index
    %c0_137 = arith.constant 0 : index
    %118 = vector.load %arg10[%c1_135, %c1_136, %c0_137] : memref<10x10x8xf32, #tpu.memory_space<vmem>>, vector<8x8x8xf32>
    %119 = vector.shape_cast %118 : vector<8x8x8xf32> to vector<64x8xf32>
    %120 = arith.truncf %119 : vector<64x8xf32> to vector<64x8xbf16>
    %c1_138 = arith.constant 1 : index
    %c1_139 = arith.constant 1 : index
    %c0_140 = arith.constant 0 : index
    %c0_141 = arith.constant 0 : index
    %121 = vector.load %arg5[%c1_138, %c1_139, %c0_140, %c0_141] : memref<3x3x8x8xbf16, #tpu.memory_space<vmem>>, vector<1x1x8x8xbf16>
    %122 = vector.shape_cast %121 : vector<1x1x8x8xbf16> to vector<8x8xbf16>
    %cst_142 = arith.constant dense<0.000000e+00> : vector<64x8xf32>
    %123 = tpu.matmul %120, %122, %cst_142 {dimension_numbers = #tpu.dot_dimension_numbers<[1], [0], [0], [1], [0, 0, 1, 1], [], []>} : vector<64x8xbf16>, vector<8x8xbf16>, vector<64x8xf32> -> vector<64x8xf32>
    %124 = arith.addf %117, %123 : vector<64x8xf32>
    %c1_143 = arith.constant 1 : index
    %c2_144 = arith.constant 2 : index
    %c0_145 = arith.constant 0 : index
    %125 = vector.load %arg10[%c1_143, %c2_144, %c0_145] : memref<10x10x8xf32, #tpu.memory_space<vmem>>, vector<8x8x8xf32>
    %126 = vector.shape_cast %125 : vector<8x8x8xf32> to vector<64x8xf32>
    %127 = arith.truncf %126 : vector<64x8xf32> to vector<64x8xbf16>
    %c1_146 = arith.constant 1 : index
    %c2_147 = arith.constant 2 : index
    %c0_148 = arith.constant 0 : index
    %c0_149 = arith.constant 0 : index
    %128 = vector.load %arg5[%c1_146, %c2_147, %c0_148, %c0_149] : memref<3x3x8x8xbf16, #tpu.memory_space<vmem>>, vector<1x1x8x8xbf16>
    %129 = vector.shape_cast %128 : vector<1x1x8x8xbf16> to vector<8x8xbf16>
    %cst_150 = arith.constant dense<0.000000e+00> : vector<64x8xf32>
    %130 = tpu.matmul %127, %129, %cst_150 {dimension_numbers = #tpu.dot_dimension_numbers<[1], [0], [0], [1], [0, 0, 1, 1], [], []>} : vector<64x8xbf16>, vector<8x8xbf16>, vector<64x8xf32> -> vector<64x8xf32>
    %131 = arith.addf %124, %130 : vector<64x8xf32>
    %c2_151 = arith.constant 2 : index
    %c0_152 = arith.constant 0 : index
    %c0_153 = arith.constant 0 : index
    %132 = vector.load %arg10[%c2_151, %c0_152, %c0_153] : memref<10x10x8xf32, #tpu.memory_space<vmem>>, vector<8x8x8xf32>
    %133 = vector.shape_cast %132 : vector<8x8x8xf32> to vector<64x8xf32>
    %134 = arith.truncf %133 : vector<64x8xf32> to vector<64x8xbf16>
    %c2_154 = arith.constant 2 : index
    %c0_155 = arith.constant 0 : index
    %c0_156 = arith.constant 0 : index
    %c0_157 = arith.constant 0 : index
    %135 = vector.load %arg5[%c2_154, %c0_155, %c0_156, %c0_157] : memref<3x3x8x8xbf16, #tpu.memory_space<vmem>>, vector<1x1x8x8xbf16>
    %136 = vector.shape_cast %135 : vector<1x1x8x8xbf16> to vector<8x8xbf16>
    %cst_158 = arith.constant dense<0.000000e+00> : vector<64x8xf32>
    %137 = tpu.matmul %134, %136, %cst_158 {dimension_numbers = #tpu.dot_dimension_numbers<[1], [0], [0], [1], [0, 0, 1, 1], [], []>} : vector<64x8xbf16>, vector<8x8xbf16>, vector<64x8xf32> -> vector<64x8xf32>
    %138 = arith.addf %131, %137 : vector<64x8xf32>
    %c2_159 = arith.constant 2 : index
    %c1_160 = arith.constant 1 : index
    %c0_161 = arith.constant 0 : index
    %139 = vector.load %arg10[%c2_159, %c1_160, %c0_161] : memref<10x10x8xf32, #tpu.memory_space<vmem>>, vector<8x8x8xf32>
    %140 = vector.shape_cast %139 : vector<8x8x8xf32> to vector<64x8xf32>
    %141 = arith.truncf %140 : vector<64x8xf32> to vector<64x8xbf16>
    %c2_162 = arith.constant 2 : index
    %c1_163 = arith.constant 1 : index
    %c0_164 = arith.constant 0 : index
    %c0_165 = arith.constant 0 : index
    %142 = vector.load %arg5[%c2_162, %c1_163, %c0_164, %c0_165] : memref<3x3x8x8xbf16, #tpu.memory_space<vmem>>, vector<1x1x8x8xbf16>
    %143 = vector.shape_cast %142 : vector<1x1x8x8xbf16> to vector<8x8xbf16>
    %cst_166 = arith.constant dense<0.000000e+00> : vector<64x8xf32>
    %144 = tpu.matmul %141, %143, %cst_166 {dimension_numbers = #tpu.dot_dimension_numbers<[1], [0], [0], [1], [0, 0, 1, 1], [], []>} : vector<64x8xbf16>, vector<8x8xbf16>, vector<64x8xf32> -> vector<64x8xf32>
    %145 = arith.addf %138, %144 : vector<64x8xf32>
    %c2_167 = arith.constant 2 : index
    %c2_168 = arith.constant 2 : index
    %c0_169 = arith.constant 0 : index
    %146 = vector.load %arg10[%c2_167, %c2_168, %c0_169] : memref<10x10x8xf32, #tpu.memory_space<vmem>>, vector<8x8x8xf32>
    %147 = vector.shape_cast %146 : vector<8x8x8xf32> to vector<64x8xf32>
    %148 = arith.truncf %147 : vector<64x8xf32> to vector<64x8xbf16>
    %c2_170 = arith.constant 2 : index
    %c2_171 = arith.constant 2 : index
    %c0_172 = arith.constant 0 : index
    %c0_173 = arith.constant 0 : index
    %149 = vector.load %arg5[%c2_170, %c2_171, %c0_172, %c0_173] : memref<3x3x8x8xbf16, #tpu.memory_space<vmem>>, vector<1x1x8x8xbf16>
    %150 = vector.shape_cast %149 : vector<1x1x8x8xbf16> to vector<8x8xbf16>
    %cst_174 = arith.constant dense<0.000000e+00> : vector<64x8xf32>
    %151 = tpu.matmul %148, %150, %cst_174 {dimension_numbers = #tpu.dot_dimension_numbers<[1], [0], [0], [1], [0, 0, 1, 1], [], []>} : vector<64x8xbf16>, vector<8x8xbf16>, vector<64x8xf32> -> vector<64x8xf32>
    %152 = arith.addf %145, %151 : vector<64x8xf32>
    %153 = vector.broadcast %87 : vector<1x8xf32> to vector<64x8xf32>
    %154 = arith.mulf %152, %153 : vector<64x8xf32>
    %155 = vector.broadcast %88 : vector<1x8xf32> to vector<64x8xf32>
    %156 = arith.addf %154, %155 : vector<64x8xf32>
    %cst_175 = arith.constant 0.000000e+00 : f32
    %157 = vector.broadcast %cst_175 : f32 to vector<64x8xf32>
    %158 = arith.maximumf %156, %157 : vector<64x8xf32>
    %c0_176 = arith.constant 0 : index
    %c0_177 = arith.constant 0 : index
    %c0_178 = arith.constant 0 : index
    %159 = vector.load %arg8[%c0_176, %c0_177, %c0_178] : memref<1x64x8xf32, #tpu.memory_space<vmem>>, vector<1x64x8xf32>
    %160 = vector.shape_cast %159 : vector<1x64x8xf32> to vector<64x8xf32>
    %161 = vector.shape_cast %158 : vector<64x8xf32> to vector<1x64x8xf32>
    tpu.vector_store %arg8[%c0_176, %c0_177, %c0_178], %161 {strides = array<i32>} : memref<1x64x8xf32, #tpu.memory_space<vmem>>, vector<1x64x8xf32>,
    return
  }
  func.func @transform_0(%arg0: i32) -> (i32, i32, i32, i32, i32) {
    %c0_i32 = arith.constant 0 : i32
    %c0_i32_0 = arith.constant 0 : i32
    %c0_i32_1 = arith.constant 0 : i32
    %c0_i32_2 = arith.constant 0 : i32
    %c0_i32_3 = arith.constant 0 : i32
    return %arg0, %c0_i32, %c0_i32_0, %c0_i32_1, %c0_i32_2 : i32, i32, i32, i32, i32
  }
  func.func @transform_1(%arg0: i32) -> (i32, i32, i32, i32) {
    %c0_i32 = arith.constant 0 : i32
    %c0_i32_0 = arith.constant 0 : i32
    %c0_i32_1 = arith.constant 0 : i32
    %c0_i32_2 = arith.constant 0 : i32
    %c0_i32_3 = arith.constant 0 : i32
    return %c0_i32, %c0_i32_0, %c0_i32_1, %c0_i32_2 : i32, i32, i32, i32
  }
  func.func @transform_2(%arg0: i32) -> (i32, i32) {
    %c0_i32 = arith.constant 0 : i32
    %c0_i32_0 = arith.constant 0 : i32
    %c0_i32_1 = arith.constant 0 : i32
    return %c0_i32, %c0_i32_0 : i32, i32
  }
  func.func @transform_3(%arg0: i32) -> (i32, i32) {
    %c0_i32 = arith.constant 0 : i32
    %c0_i32_0 = arith.constant 0 : i32
    %c0_i32_1 = arith.constant 0 : i32
    return %c0_i32, %c0_i32_0 : i32, i32
  }
  func.func @transform_4(%arg0: i32) -> (i32, i32, i32, i32) {
    %c0_i32 = arith.constant 0 : i32
    %c0_i32_0 = arith.constant 0 : i32
    %c0_i32_1 = arith.constant 0 : i32
    %c0_i32_2 = arith.constant 0 : i32
    %c0_i32_3 = arith.constant 0 : i32
    return %c0_i32, %c0_i32_0, %c0_i32_1, %c0_i32_2 : i32, i32, i32, i32
  }
  func.func @transform_5(%arg0: i32) -> (i32, i32) {
    %c0_i32 = arith.constant 0 : i32
    %c0_i32_0 = arith.constant 0 : i32
    %c0_i32_1 = arith.constant 0 : i32
    return %c0_i32, %c0_i32_0 : i32, i32
  }
  func.func @transform_6(%arg0: i32) -> (i32, i32) {
    %c0_i32 = arith.constant 0 : i32
    %c0_i32_0 = arith.constant 0 : i32
    %c0_i32_1 = arith.constant 0 : i32
    return %c0_i32, %c0_i32_0 : i32, i32
  }
  func.func @transform_7(%arg0: i32) -> (i32, i32, i32) {
    %c0_i32 = arith.constant 0 : i32
    %c0_i32_0 = arith.constant 0 : i32
    %c0_i32_1 = arith.constant 0 : i32
    return %arg0, %c0_i32, %c0_i32_0 : i32, i32, i32
  }
}

</mosaic_0001>

<bundles_post_ra>
// kernel: down_block_forward.1
= control target key start
LH: loop header
LB: loop body
LE: loop exit
PB: predicated region body
PF: predicated region fallthrough
CT: control target
= control target key end

     0   :  { %s2813_s24 = smov 0   ;;  %s3304_s0 = inlined_call_operand.vmem [shape: f32[2,8,2,8,8], index: 0, kind: input, shape index: {}]   ;;  %s3305_s1 = inlined_call_operand.vmem [shape: bf16[3,3,4,8], index: 1, kind: input, shape index: {}]   ;;  %s3306_s2 = inlined_call_operand.vmem [shape: f32[1,8], index: 2, kind: input, shape index: {}]   ;;  %s3307_s3 = inlined_call_operand.vmem [shape: f32[1,8], index: 3, kind: input, shape index: {}]   ;;  %s3308_s4 = inlined_call_operand.vmem [shape: bf16[3,3,8,8], index: 4, kind: input, shape index: {}]   ;;  %s3309_s5 = inlined_call_operand.vmem [shape: f32[1,8], index: 5, kind: input, shape index: {}]   ;;  %s3310_s6 = inlined_call_operand.vmem [shape: f32[1,8], index: 6, kind: input, shape index: {}]   ;;  %s3311_s7 = inlined_call_operand.vmem [shape: f32[2,64,8], index: 7, kind: output, shape index: {}]  }
   0x1 LB: > { %s2352_s25 = sadd.s32 4294967295, %s2769_s24   ;;  %p2356_p0 = scmp.ge.s32.totalorder %s2769_s24, 1  ;;  %s2769_s24 = sphi %s2813_s24, %s17_s24  }
   0x2   : > { %p237_p1 = scmp.lt.s32.totalorder %s2769_s24, 3 }
   0x4   : > { %p238_p2 = pnand %p2356_p0, %p237_p1 }
   0x6   : > { %241 = sbr.rel (%p238_p2) target bundleno = 712 (0x2c8), region = 48 }
   0xb   : > { %p2821_p3 = scmp.lt.s32.totalorder %s2352_s25, 1  ;;  %vm345_vm0 = vcmask 31744   ;;  %vm347_vm1 = vcmask 25600   ;;  %v2771_v0 = vmov 0.0   ;;  %s2772_s8 = smov 124   ;;  %vm417_vm2 = vcmask 1041408  }
   0xc   : > { %353 = vst.msk [vmem:[#allocation2 + $0x30] sm:$0xff] %vm345_vm0, %v2771_v0  ;;  %346 = vst.msk [vmem:[#allocation2] sm:$0xff] %vm345_vm0, %v2771_v0  ;;  %v2369_v17 = vld [vmem:[%s3305_s1 + $0x2] sm:$0x3]  ;;  %v390_v19 = vld [vmem:[%s3305_s1] sm:$0x3] }
   0xd   : > { %354 = vst.msk [vmem:[#allocation2 + $0x38] sm:$0x3] %vm347_vm1, %v2771_v0  ;;  %348 = vst.msk [vmem:[#allocation2 + $0x8] sm:$0x3] %vm347_vm1, %v2771_v0  ;;  %s3332_s25 = smov (!%p2821_p3, %s2352_s25), 1  ;;  %2735 = vmatprep.subr.msk.bf16.mxu0 %vm417_vm2, %v2369_v17  ;;  %v419_v18 = vsel %vm417_vm2, %v2369_v17, 0  ;;  %2736 = vmatprep.subr.msk.bf16.mxu1 %vm417_vm2, %v390_v19 }
   0xe   : > { %349 = vst.msk [vmem:[#allocation2 + $0x10] sm:$0xff] %vm345_vm0, %v2771_v0  ;;  %351 = vst.msk [vmem:[#allocation2 + $0x20] sm:$0xff] %vm345_vm0, %v2771_v0  ;;  %s2463_s27 = sshll.u32 %s3332_s25, 7  ;;  %v2378_v20 = vld [vmem:[%s3305_s1 + $0x4] sm:$0x3]  ;;  %2556 = vmatpush3.bf16.msra.mxu0 %v419_v18  ;;  %v499_v22 = vsel %vm417_vm2, %v390_v19, 0 }
   0xf   : > { %350 = vst.msk [vmem:[#allocation2 + $0x18] sm:$0x3] %vm347_vm1, %v2771_v0  ;;  %352 = vst.msk [vmem:[#allocation2 + $0x28] sm:$0x3] %vm347_vm1, %v2771_v0  ;;  %s2873_s30 = scalar_lea.vmem %s3304_s0, %s2463_s27  ;;  %2566 = vmatpush3.bf16.msra.mxu1 %v499_v22  ;;  %2737 = vmatprep.subr.msk.bf16.mxu0 %vm417_vm2, %v2378_v20  ;;  %v2383_v30 = vld [vmem:[%s3305_s1 + $0x6] sm:$0x3] }
  0x10   : > { %355 = vst.msk [vmem:[#allocation2 + $0x40] sm:$0xff] %vm345_vm0, %v2771_v0  ;;  %357 = vst.msk [vmem:[#allocation2 + $0x50] sm:$0xff] %vm345_vm0, %v2771_v0  ;;  %v282_v1 = vld [vmem:[%s2873_s30 + $0x20] sm:$0xff]  ;;  %v2363_v2 = vld [vmem:[%s2873_s30 + $0x28] sm:$0xff]  ;;  %2738 = vmatprep.subr.msk.bf16.mxu1 %vm417_vm2, %v2383_v30  ;;  %v593_v59 = vsel %vm417_vm2, %v2378_v20, 0  ;;  %v695_v60 = vsel %vm417_vm2, %v2383_v30, 0 }
  0x11   : > { %356 = vst.msk [vmem:[#allocation2 + $0x48] sm:$0x3] %vm347_vm1, %v2771_v0  ;;  %358 = vst.msk [vmem:[#allocation2 + $0x58] sm:$0x3] %vm347_vm1, %v2771_v0  ;;  %v280_v3 = vld [vmem:[%s2873_s30] sm:$0xff]  ;;  %v299_v4 = vmax.f32 %v282_v1, %v2363_v2  ;;  %v2361_v5 = vld [vmem:[%s2873_s30 + $0x8] sm:$0xff] }
  0x12   : > { %359 = vst.msk [vmem:[#allocation2 + $0x60] sm:$0xff] %vm345_vm0, %v2771_v0  ;;  %361 = vst.msk [vmem:[#allocation2 + $0x70] sm:$0xff] %vm345_vm0, %v2771_v0  ;;  %v283_v6 = vld [vmem:[%s2873_s30 + $0x30] sm:$0xff]  ;;  %v2364_v7 = vld [vmem:[%s2873_s30 + $0x38] sm:$0xff]  ;;  %v297_v8 = vmax.f32 %v280_v3, %v2361_v5  ;;  %vm1317_vm3 = vcmask 64512   ;;  %vm1319_vm4 = vcmask 58368  }
  0x13   : > { %360 = vst.msk [vmem:[#allocation2 + $0x68] sm:$0x3] %vm347_vm1, %v2771_v0  ;;  %362 = vst.msk [vmem:[#allocation2 + $0x78] sm:$0x3] %vm347_vm1, %v2771_v0  ;;  %v281_v9 = vld [vmem:[%s2873_s30 + $0x10] sm:$0xff]  ;;  %v2362_v10 = vld [vmem:[%s2873_s30 + $0x18] sm:$0xff]  ;;  %317 = vrot.lane.b32.xlu1 %v299_v4, %s2772_s8  ;;  %v300_v11 = vmax.f32 %v283_v6, %v2364_v7 }
  0x14   : > { %363 = vst.msk [vmem:[#allocation2 + $0x80] sm:$0xff] %vm345_vm0, %v2771_v0  ;;  %365 = vst.msk [vmem:[#allocation2 + $0x90] sm:$0xff] %vm345_vm0, %v2771_v0  ;;  %313 = vrot.lane.b32.xlu0 %v297_v8, %s2772_s8  ;;  %v298_v12 = vmax.f32 %v281_v9, %v2362_v10  ;;  %v285_v13 = vld [vmem:[%s2873_s30 + $0x50] sm:$0xff]  ;;  %v2366_v14 = vld [vmem:[%s2873_s30 + $0x58] sm:$0xff]  ;;  %vm1389_vm5 = vcmask 1043456   ;;  %s2464_s11 = sshll.u32 %s3332_s25, 6 }
  0x15   : > { %364 = vst.msk [vmem:[#allocation2 + $0x88] sm:$0x3] %vm347_vm1, %v2771_v0  ;;  %366 = vst.msk [vmem:[#allocation2 + $0x98] sm:$0x3] %vm347_vm1, %v2771_v0  ;;  %v284_v15 = vld [vmem:[%s2873_s30 + $0x40] sm:$0xff]  ;;  %v2365_v16 = vld [vmem:[%s2873_s30 + $0x48] sm:$0xff]  ;;  %v302_v21 = vmax.f32 %v285_v13, %v2366_v14  ;;  %s3277_s25 = scalar_lea.vmem %s3311_s7, %s2464_s11 }
  0x16   : > { %v301_v23 = vmax.f32 %v284_v15, %v2365_v16  ;;  %v287_v24 = vld [vmem:[%s2873_s30 + $0x70] sm:$0xff]  ;;  %v2368_v25 = vld [vmem:[%s2873_s30 + $0x78] sm:$0xff]  ;;  %v286_v26 = vld [vmem:[%s2873_s30 + $0x60] sm:$0xff]  ;;  %1325 = vst.msk [vmem:[#allocation3 + $0x30] sm:$0xff] %vm1317_vm3, %v2771_v0 }
  0x17   : > { %319 = vrot.lane.b32.xlu1 %v300_v11, %s2772_s8  ;;  %v2367_v27 = vld [vmem:[%s2873_s30 + $0x68] sm:$0xff]  ;;  %v304_v28 = vmax.f32 %v287_v24, %v2368_v25  ;;  %v378_v43 = vld [vmem:[#allocation2] sm:$0xff]  ;;  %1326 = vst.msk [vmem:[#allocation3 + $0x38] sm:$0x3] %vm1319_vm4, %v2771_v0  ;;  %1320 = vst.msk [vmem:[#allocation3 + $0x8] sm:$0x3] %vm1319_vm4, %v2771_v0 }
  0x18   : > { %315 = vrot.lane.b32.xlu0 %v298_v12, %s2772_s8  ;;  %v303_v29 = vmax.f32 %v286_v26, %v2367_v27  ;;  %v391_v42 = vld [vmem:[#allocation2 + $0x1] sm:$0xff]  ;;  %v2393_v63 = vld [vmem:[%s3305_s1 + $0xa] sm:$0x3]  ;;  %v2398_v26 = vld [vmem:[%s3305_s1 + $0xc] sm:$0x3]  ;;  %1318 = vst.msk [vmem:[#allocation3] sm:$0xff] %vm1317_vm3, %v2771_v0 }
  0x19   : > { %v2388_v61 = vld [vmem:[%s3305_s1 + $0x8] sm:$0x3]  ;;  %v899_v24 = vsel %vm417_vm2, %v2393_v63, 0  ;;  %v2403_v27 = vld [vmem:[%s3305_s1 + $0xe] sm:$0x3]  ;;  %1321 = vst.msk [vmem:[#allocation3 + $0x10] sm:$0xff] %vm1317_vm3, %v2771_v0 }
  0x1a   : > { %v566_v7 = vld [vmem:[#allocation2 + $0x2] sm:$0xff]  ;;  %1322 = vst.msk [vmem:[#allocation3 + $0x18] sm:$0x3] %vm1319_vm4, %v2771_v0  ;;  %1324 = vst.msk [vmem:[#allocation3 + $0x28] sm:$0x3] %vm1319_vm4, %v2771_v0 }
  0x1b   : > { %323 = vrot.lane.b32.xlu1 %v302_v21, %s2772_s8  ;;  %1323 = vst.msk [vmem:[#allocation3 + $0x20] sm:$0xff] %vm1317_vm3, %v2771_v0  ;;  %1327 = vst.msk [vmem:[#allocation3 + $0x40] sm:$0xff] %vm1317_vm3, %v2771_v0 }
  0x1c   : > { %321 = vrot.lane.b32.xlu0 %v301_v23, %s2772_s8  ;;  %1328 = vst.msk [vmem:[#allocation3 + $0x48] sm:$0x3] %vm1319_vm4, %v2771_v0  ;;  %1330 = vst.msk [vmem:[#allocation3 + $0x58] sm:$0x3] %vm1319_vm4, %v2771_v0 }
  0x1d   : > { %1329 = vst.msk [vmem:[#allocation3 + $0x50] sm:$0xff] %vm1317_vm3, %v2771_v0  ;;  %1331 = vst.msk [vmem:[#allocation3 + $0x60] sm:$0xff] %vm1317_vm3, %v2771_v0 }
  0x1e   : > { %1332 = vst.msk [vmem:[#allocation3 + $0x68] sm:$0x3] %vm1319_vm4, %v2771_v0  ;;  %1334 = vst.msk [vmem:[#allocation3 + $0x78] sm:$0x3] %vm1319_vm4, %v2771_v0 }
  0x1f   : > { %327 = vrot.lane.b32.xlu1 %v304_v28, %s2772_s8  ;;  %1333 = vst.msk [vmem:[#allocation3 + $0x70] sm:$0xff] %vm1317_vm3, %v2771_v0  ;;  %1335 = vst.msk [vmem:[#allocation3 + $0x80] sm:$0xff] %vm1317_vm3, %v2771_v0 }
  0x20   : > { %325 = vrot.lane.b32.xlu0 %v303_v29, %s2772_s8  ;;  %1336 = vst.msk [vmem:[#allocation3 + $0x88] sm:$0x3] %vm1319_vm4, %v2771_v0  ;;  %1338 = vst.msk [vmem:[#allocation3 + $0x98] sm:$0x3] %vm1319_vm4, %v2771_v0 }
  0x21   : > { %1337 = vst.msk [vmem:[#allocation3 + $0x90] sm:$0xff] %vm1317_vm3, %v2771_v0  ;;  %v3085_v0 = vld [vmem:[%s3308_s4 + $0x8] sm:$0xf] }
  0x22   : > { %3315 = vst [vmem:[#allocation4_spill] sm:$0xff] %v3085_v0 }
  0x85   : > { %v318_v31 = vpop.permute.xlu1 %317 }
  0x86   : > { %v339_v32 = vmax.f32 %v299_v4, %v318_v31  ;;  %v314_v33 = vpop.permute.xlu0 %313 }
  0x87   : > { %v337_v34 = vmax.f32 %v297_v8, %v314_v33 }
  0x88   : > { %370 = vst.msk [vmem:[#allocation2 + $0x31] sm:$0xff] %vm345_vm0, %v339_v32 }
  0x89   : > { %368 = vst.msk [vmem:[#allocation2 + $0x11] sm:$0xff] %vm345_vm0, %v337_v34  ;;  %v320_v35 = vpop.permute.xlu1 %319 }
  0x8a   : > { %v340_v36 = vmax.f32 %v300_v11, %v320_v35  ;;  %v316_v37 = vpop.permute.xlu0 %315 }
  0x8b   : > { %v338_v38 = vmax.f32 %v298_v12, %v316_v37  ;;  %v1002_v37 = vsel %vm417_vm2, %v2398_v26, 0 }
  0x8c   : > { %371 = vst.msk [vmem:[#allocation2 + $0x41] sm:$0xff] %vm345_vm0, %v340_v36 }
  0x8d   : > { %369 = vst.msk [vmem:[#allocation2 + $0x21] sm:$0xff] %vm345_vm0, %v338_v38  ;;  %v324_v39 = vpop.permute.xlu1 %323 }
  0x8e   : > { %v342_v40 = vmax.f32 %v302_v21, %v324_v39  ;;  %v322_v41 = vpop.permute.xlu0 %321  ;;  %v797_v21 = vsel %vm417_vm2, %v2388_v61, 0  ;;  %v1104_v39 = vsel %vm417_vm2, %v2403_v27, 0 }
  0x8f   : > { %v341_v44 = vmax.f32 %v301_v23, %v322_v41  ;;  %v2926_v52 = vld [vmem:[#allocation2 + $0x31] sm:$0xff] }
  0x90   : > { %373 = vst.msk [vmem:[#allocation2 + $0x61] sm:$0xff] %vm345_vm0, %v342_v40  ;;  %v2922_v45 = vld [vmem:[#allocation2 + $0x11] sm:$0xff] }
  0x91   : > { %v379_v46 = vld [vmem:[#allocation2 + $0x10] sm:$0xff]  ;;  %372 = vst.msk [vmem:[#allocation2 + $0x51] sm:$0xff] %vm345_vm0, %v341_v44  ;;  %v328_v47 = vpop.permute.xlu1 %327  ;;  %v399_v48 = vpack.c.bf16 %v2922_v45, %v391_v42 }
  0x92   : > { %v386_v49 = vpack.c.bf16 %v379_v46, %v378_v43  ;;  %v344_v50 = vmax.f32 %v304_v28, %v328_v47  ;;  %v326_v51 = vpop.permute.xlu0 %325  ;;  %v381_v53 = vld [vmem:[#allocation2 + $0x30] sm:$0xff] }
  0x93   : > { %v343_v54 = vmax.f32 %v303_v29, %v326_v51  ;;  %2557 = vmatprep.mubr.msk.bf16.mxu0 %vm345_vm0, %v399_v48  ;;  %v2949_v62 = vld [vmem:[#allocation2 + $0x41] sm:$0xff]  ;;  %v567_v8 = vld [vmem:[#allocation2 + $0x12] sm:$0xff]  ;;  %v2408_v41 = vld [vmem:[%s3305_s1 + $0x10] sm:$0x3] }
  0x94   : > { %2567 = vmatprep.mubr.msk.bf16.mxu1 %vm345_vm0, %v386_v49  ;;  %375 = vst.msk [vmem:[#allocation2 + $0x81] sm:$0xff] %vm345_vm0, %v344_v50  ;;  %v2931_v55 = vld [vmem:[#allocation2 + $0x21] sm:$0xff]  ;;  %v574_v14 = vpack.c.bf16 %v567_v8, %v566_v7  ;;  %v569_v17 = vld [vmem:[#allocation2 + $0x32] sm:$0xff]  ;;  %v779_v35 = vpack.c.bf16 %v2949_v62, %v2926_v52 }
  0x95   : > { %v380_v56 = vld [vmem:[#allocation2 + $0x20] sm:$0xff]  ;;  %374 = vst.msk [vmem:[#allocation2 + $0x71] sm:$0xff] %vm345_vm0, %v343_v54  ;;  %v2936_v57 = vpack.c.bf16 %v2926_v52, %v2931_v55  ;;  %v778_v33 = vpack.c.bf16 %v2931_v55, %v2922_v45  ;;  %v982_v47 = vld [vmem:[#allocation2 + $0x90] sm:$0xff] }
  0x96   : > { %v2938_v58 = vpack.c.bf16 %v381_v53, %v380_v56  ;;  %v382_v2 = vld [vmem:[#allocation2 + $0x40] sm:$0xff]  ;;  %v676_v15 = vpack.c.bf16 %v380_v56, %v379_v46  ;;  %v1206_v46 = vsel %vm417_vm2, %v2408_v41, 0  ;;  %v1084_v48 = vld [vmem:[#allocation2 + $0x91] sm:$0xff] }
  0x97   : > { %2558 = vmatmul.mubr.msk.bf16.vlgmr.msra.gmra.mxu0 %vm345_vm0, %v2936_v57  ;;  %v397_v6 = vld [vmem:[#allocation2 + $0x61] sm:$0xff]  ;;  %v677_v20 = vpack.c.bf16 %v382_v2, %v381_v53  ;;  %v1186_v51 = vld [vmem:[#allocation2 + $0x92] sm:$0xff] }
  0x98   : > { %2568 = vmatmul.mubr.msk.bf16.vlgmr.msra.gmra.mxu1 %vm345_vm0, %v2938_v58  ;;  %2576 = vmatpush3.bf16.msra.mxu0 %v593_v59  ;;  %v2954_v1 = vld [vmem:[#allocation2 + $0x51] sm:$0xff]  ;;  %v384_v10 = vld [vmem:[#allocation2 + $0x60] sm:$0xff] }
  0x99   : > { %v383_v3 = vld [vmem:[#allocation2 + $0x50] sm:$0xff]  ;;  %2586 = vmatpush3.bf16.msra.mxu1 %v695_v60  ;;  %v2958_v4 = vpack.c.bf16 %v2954_v1, %v2949_v62  ;;  %2739 = vmatprep.subr.msk.bf16.mxu0 %vm417_vm2, %v2388_v61  ;;  %v568_v16 = vld [vmem:[#allocation2 + $0x22] sm:$0xff]  ;;  %v780_v38 = vpack.c.bf16 %v397_v6, %v2954_v1 }
  0x9a   : > { %v2960_v5 = vpack.c.bf16 %v383_v3, %v382_v2  ;;  %2740 = vmatprep.subr.msk.bf16.mxu1 %vm417_vm2, %v2393_v63  ;;  %v571_v18 = vld [vmem:[#allocation2 + $0x52] sm:$0xff]  ;;  %v575_v19 = vpack.c.bf16 %v569_v17, %v568_v16  ;;  %v570_v22 = vld [vmem:[#allocation2 + $0x42] sm:$0xff]  ;;  %v678_v25 = vpack.c.bf16 %v384_v10, %v383_v3  ;;  %v880_v34 = vpack.c.bf16 %v568_v16, %v567_v8 }
  0x9b   : > { %2561 = vmatprep.mubr.msk.bf16.mxu0 %vm345_vm0, %v2958_v4  ;;  %v576_v23 = vpack.c.bf16 %v571_v18, %v570_v22  ;;  %v675_v29 = vld [vmem:[#allocation2 + $0x80] sm:$0xff]  ;;  %v881_v36 = vpack.c.bf16 %v570_v22, %v569_v17 }
  0x9c   : > { %2571 = vmatprep.mubr.msk.bf16.mxu1 %vm345_vm0, %v2960_v5  ;;  %v398_v9 = vld [vmem:[#allocation2 + $0x71] sm:$0xff]  ;;  %v572_v30 = vld [vmem:[#allocation2 + $0x62] sm:$0xff]  ;;  %v986_v49 = vpack.c.bf16 %v982_v47, %v675_v29 }
  0x9d   : > { %v385_v11 = vld [vmem:[#allocation2 + $0x70] sm:$0xff]  ;;  %v2968_v12 = vpack.c.bf16 %v398_v9, %v397_v6  ;;  %v882_v40 = vpack.c.bf16 %v572_v30, %v571_v18  ;;  %v777_v42 = vld [vmem:[#allocation2 + $0x81] sm:$0xff] }
  0x9e   : > { %v2970_v13 = vpack.c.bf16 %v385_v11, %v384_v10  ;;  %v573_v28 = vld [vmem:[#allocation2 + $0x72] sm:$0xff]  ;;  %v679_v32 = vpack.c.bf16 %v675_v29, %v385_v11  ;;  %v879_v43 = vld [vmem:[#allocation2 + $0x82] sm:$0xff]  ;;  %v781_v44 = vpack.c.bf16 %v777_v42, %v398_v9  ;;  %v1088_v50 = vpack.c.bf16 %v1084_v48, %v777_v42 }
  0x9f   : > { %2562 = vmatmul.mubr.msk.bf16.gmra.mxu0 %vm345_vm0, %v2968_v12  ;;  %v577_v31 = vpack.c.bf16 %v573_v28, %v572_v30  ;;  %v883_v45 = vpack.c.bf16 %v879_v43, %v573_v28  ;;  %v1190_v52 = vpack.c.bf16 %v1186_v51, %v879_v43  ;;  %v2415_v53 = vld [vmem:[%s3308_s4 + $0x4] sm:$0xf]  ;;  %v1362_v55 = vld [vmem:[%s3308_s4] sm:$0xf] }
  0xa0   : > { %2572 = vmatmul.mubr.msk.bf16.gmra.mxu1 %vm345_vm0, %v2970_v13  ;;  %2577 = vmatprep.mubr.msk.bf16.mxu0 %vm345_vm0, %v574_v14  ;;  %v1391_v54 = vsel %vm1389_vm5, %v2415_v53, 0  ;;  %v1471_v56 = vsel %vm1389_vm5, %v1362_v55, 0 }
  0xa1   : > { %2587 = vmatprep.mubr.msk.bf16.mxu1 %vm345_vm0, %v676_v15 }
  0xa7   : > { %2578 = vmatmul.mubr.msk.bf16.vlgmr.msra.gmra.mxu0 %vm345_vm0, %v575_v19 }
  0xa8   : > { %2588 = vmatmul.mubr.msk.bf16.vlgmr.msra.gmra.mxu1 %vm345_vm0, %v677_v20  ;;  %2596 = vmatpush3.bf16.msra.mxu0 %v797_v21 }
  0xa9   : > { %2581 = vmatprep.mubr.msk.bf16.mxu0 %vm345_vm0, %v576_v23  ;;  %2591 = vmatprep.mubr.msk.bf16.mxu1 %vm345_vm0, %v678_v25 }
  0xaa   : > { %2606 = vmatpush3.bf16.msra.mxu1 %v899_v24  ;;  %2741 = vmatprep.subr.msk.bf16.mxu0 %vm417_vm2, %v2398_v26 }
  0xab   : > { %2742 = vmatprep.subr.msk.bf16.mxu1 %vm417_vm2, %v2403_v27 }
  0xaf   : > { %2582 = vmatmul.mubr.msk.bf16.gmra.mxu0 %vm345_vm0, %v577_v31 }
  0xb0   : > { %2592 = vmatmul.mubr.msk.bf16.gmra.mxu1 %vm345_vm0, %v679_v32  ;;  %2597 = vmatprep.mubr.msk.bf16.mxu0 %vm345_vm0, %v778_v33 }
  0xb1   : > { %2607 = vmatprep.mubr.msk.bf16.mxu1 %vm345_vm0, %v880_v34 }
  0xb7   : > { %2598 = vmatmul.mubr.msk.bf16.vlgmr.msra.gmra.mxu0 %vm345_vm0, %v779_v35 }
  0xb8   : > { %2608 = vmatmul.mubr.msk.bf16.vlgmr.msra.gmra.mxu1 %vm345_vm0, %v881_v36  ;;  %2616 = vmatpush3.bf16.msra.mxu0 %v1002_v37 }
  0xb9   : > { %2601 = vmatprep.mubr.msk.bf16.mxu0 %vm345_vm0, %v780_v38  ;;  %2611 = vmatprep.mubr.msk.bf16.mxu1 %vm345_vm0, %v882_v40 }
  0xba   : > { %2626 = vmatpush3.bf16.msra.mxu1 %v1104_v39  ;;  %2743 = vmatprep.subr.msk.bf16.mxu0 %vm417_vm2, %v2408_v41 }
  0xbb   : > { %2744 = vmatprep.subr.msk.bf16.mxu1 %vm1389_vm5, %v2415_v53 }
  0xbf   : > { %2602 = vmatmul.mubr.msk.bf16.gmra.mxu0 %vm345_vm0, %v781_v44 }
  0xc0   : > { %2612 = vmatmul.mubr.msk.bf16.gmra.mxu1 %vm345_vm0, %v883_v45  ;;  %2617 = vmatprep.mubr.msk.bf16.mxu0 %vm345_vm0, %v2938_v58 }
  0xc1   : > { %2627 = vmatprep.mubr.msk.bf16.mxu1 %vm345_vm0, %v2936_v57  ;;  %v3092_v57 = vld [vmem:[%s3308_s4 + $0xc] sm:$0xf] }
  0xc2   : > { %3316 = vst [vmem:[#allocation5_spill] sm:$0xff] %v3092_v57 }
  0xc7   : > { %2618 = vmatmul.mubr.msk.bf16.vlgmr.msra.gmra.mxu0 %vm345_vm0, %v2960_v5 }
  0xc8   : > { %2628 = vmatmul.mubr.msk.bf16.vlgmr.msra.gmra.mxu1 %vm345_vm0, %v2958_v4  ;;  %2636 = vmatpush3.bf16.msra.mxu0 %v1206_v46 }
  0xc9   : > { %2621 = vmatprep.mubr.msk.bf16.mxu0 %vm345_vm0, %v2970_v13  ;;  %2631 = vmatprep.mubr.msk.bf16.mxu1 %vm345_vm0, %v2968_v12 }
  0xca   : > { %2646 = vmatpush3.bf16.msra.mxu1 %v1391_v54  ;;  %2745 = vmatprep.subr.msk.bf16.mxu0 %vm1389_vm5, %v1362_v55 }
  0xcb   : > { %2746 = vmatprep.subr.msk.bf16.mxu1 %vm1389_vm5, %v3085_v0 }
  0xcf   : > { %2622 = vmatmul.mubr.msk.bf16.gmra.mxu0 %vm345_vm0, %v986_v49 }
  0xd0   : > { %2632 = vmatmul.mubr.msk.bf16.gmra.mxu1 %vm345_vm0, %v1088_v50  ;;  %2637 = vmatprep.mubr.msk.bf16.mxu0 %vm345_vm0, %v575_v19 }
  0xd7   : > { %2638 = vmatmul.mubr.msk.bf16.vlgmr.msra.gmra.mxu0 %vm345_vm0, %v576_v23 }
  0xd8   : > { %2641 = vmatprep.mubr.msk.bf16.mxu0 %vm345_vm0, %v577_v31  ;;  %2656 = vmatpush3.bf16.msra.mxu0 %v1471_v56 }
  0xd9   : > { %2747 = vmatprep.subr.msk.bf16.mxu0 %vm1389_vm5, %v3092_v57 }
  0xdf   : > { %2642 = vmatmul.mubr.msk.bf16.gmra.mxu0 %vm345_vm0, %v1190_v52 }
 0x157   : > { %v2559_v58 = vpop.f32.mrf.mxu0 }
 0x158   : > { %v2569_v59 = vpop.f32.mrf.mxu1 }
 0x159   : > { %v455_v60 = vpop.f32.mrf.mxu0  ;;  %v544_v41 = vadd.f32 %v2569_v59, %v2559_v58 }
 0x15a   : > { %v535_v61 = vpop.f32.mrf.mxu1 }
 0x15b   : > { %v2560_v62 = vpop.f32.mrf.mxu0  ;;  %v536_v44 = vadd.f32 %v535_v61, %v455_v60 }
 0x15c   : > { %v2570_v63 = vpop.f32.mrf.mxu1 }
 0x15d   : > { %v458_v1 = vpop.f32.mrf.mxu0  ;;  %v547_v48 = vadd.f32 %v2570_v63, %v2560_v62 }
 0x15e   : > { %v538_v2 = vpop.f32.mrf.mxu1 }
 0x15f   : > { %v2563_v3 = vpop.f32.mrf.mxu0  ;;  %v539_v51 = vadd.f32 %v538_v2, %v458_v1 }
 0x160   : > { %v2573_v4 = vpop.f32.mrf.mxu1 }
 0x161   : > { %v471_v5 = vpop.f32.mrf.mxu0  ;;  %v560_v55 = vadd.f32 %v2573_v4, %v2563_v3 }
 0x162   : > { %v551_v6 = vpop.f32.mrf.mxu1 }
 0x163   : > { %v2564_v7 = vpop.f32.mrf.mxu0  ;;  %v552_v58 = vadd.f32 %v551_v6, %v471_v5 }
 0x164   : > { %v2574_v8 = vpop.f32.mrf.mxu1 }
 0x165   : > { %v3096_v9 = vpop.f32.mrf.mxu0 }
 0x166   : > { %v554_v10 = vpop.f32.mrf.mxu1 }
 0x167   : > { %v2579_v11 = vpop.f32.mrf.mxu0  ;;  %v555_v2 = vadd.f32 %v554_v10, %v3096_v9 }
 0x168   : > { %v2589_v12 = vpop.f32.mrf.mxu1  ;;  %v662_v45 = vadd.f32 %v2579_v11, %v544_v41  ;;  %v563_v11 = vadd.f32 %v2574_v8, %v2564_v7 }
 0x169   : > { %v629_v13 = vpop.f32.mrf.mxu0 }
 0x16a   : > { %v731_v14 = vpop.f32.mrf.mxu1  ;;  %v660_v49 = vadd.f32 %v629_v13, %v536_v44  ;;  %v764_v52 = vadd.f32 %v2589_v12, %v662_v45 }
 0x16b   : > { %v2580_v15 = vpop.f32.mrf.mxu0 }
 0x16c   : > { %v2590_v16 = vpop.f32.mrf.mxu1  ;;  %v663_v53 = vadd.f32 %v2580_v15, %v547_v48  ;;  %v762_v57 = vadd.f32 %v731_v14, %v660_v49 }
 0x16d   : > { %v632_v17 = vpop.f32.mrf.mxu0 }
 0x16e   : > { %v734_v18 = vpop.f32.mrf.mxu1  ;;  %v661_v0 = vadd.f32 %v632_v17, %v539_v51 }
 0x16f   : > { %v2583_v19 = vpop.f32.mrf.mxu0 }
 0x170   : > { %v2593_v20 = vpop.f32.mrf.mxu1  ;;  %v666_v59 = vadd.f32 %v2583_v19, %v560_v55  ;;  %v763_v63 = vadd.f32 %v734_v18, %v661_v0 }
 0x171   : > { %v645_v21 = vpop.f32.mrf.mxu0 }
 0x172   : > { %v747_v22 = vpop.f32.mrf.mxu1  ;;  %v664_v41 = vadd.f32 %v645_v21, %v552_v58  ;;  %v768_v12 = vadd.f32 %v2593_v20, %v666_v59 }
 0x173   : > { %v2584_v23 = vpop.f32.mrf.mxu0 }
 0x174   : > { %v2594_v24 = vpop.f32.mrf.mxu1  ;;  %v667_v3 = vadd.f32 %v2584_v23, %v563_v11  ;;  %v766_v6 = vadd.f32 %v747_v22, %v664_v41  ;;  %v3111_v22 = vld [vmem:[%s3306_s2] ss:$0 sm:$0xff] }
 0x175   : > { %v648_v25 = vpop.f32.mrf.mxu0 }
 0x176   : > { %v3098_v26 = vpop.f32.mrf.mxu1  ;;  %v665_v19 = vadd.f32 %v648_v25, %v555_v2  ;;  %v769_v8 = vadd.f32 %v2594_v24, %v667_v3 }
 0x177   : > { %v2599_v27 = vpop.f32.mrf.mxu0 }
 0x178   : > { %v2609_v28 = vpop.f32.mrf.mxu1  ;;  %v767_v10 = vadd.f32 %v3098_v26, %v665_v19 }
 0x179   : > { %v833_v29 = vpop.f32.mrf.mxu0 }
 0x17a   : > { %v935_v30 = vpop.f32.mrf.mxu1  ;;  %v864_v60 = vadd.f32 %v833_v29, %v762_v57 }
 0x17b   : > { %v2600_v31 = vpop.f32.mrf.mxu0 }
 0x17c   : > { %v2610_v32 = vpop.f32.mrf.mxu1  ;;  %v966_v14 = vadd.f32 %v935_v30, %v864_v60 }
 0x17d   : > { %v836_v33 = vpop.f32.mrf.mxu0 }
 0x17e   : > { %v938_v34 = vpop.f32.mrf.mxu1  ;;  %v865_v15 = vadd.f32 %v836_v33, %v763_v63 }
 0x17f   : > { %v2603_v35 = vpop.f32.mrf.mxu0 }
 0x180   : > { %v2613_v36 = vpop.f32.mrf.mxu1  ;;  %v967_v18 = vadd.f32 %v938_v34, %v865_v15 }
 0x181   : > { %v849_v37 = vpop.f32.mrf.mxu0 }
 0x182   : > { %v3100_v38 = vpop.f32.mrf.mxu1  ;;  %v868_v21 = vadd.f32 %v849_v37, %v766_v6  ;;  %v2414_v37 = vld [vmem:[%s3307_s3] ss:$0 sm:$0xff] }
 0x183   : > { %3317 = vst [vmem:[#allocation6_spill] sm:$0xff] %v3100_v38  ;;  %v2604_v39 = vpop.f32.mrf.mxu0 }
 0x184   : > { %v3102_v40 = vpop.f32.mrf.mxu1  ;;  %v871_v23 = vadd.f32 %v2604_v39, %v769_v8 }
 0x185   : > { %3318 = vst [vmem:[#allocation7_spill] sm:$0xff] %v3102_v40  ;;  %v852_v42 = vpop.f32.mrf.mxu0  ;;  %v866_v40 = vadd.f32 %v2599_v27, %v764_v52 }
 0x186   : > { %v3104_v43 = vpop.f32.mrf.mxu1 }
 0x187   : > { %3319 = vst [vmem:[#allocation8_spill] sm:$0xff] %v3104_v43  ;;  %v2619_v46 = vpop.f32.mrf.mxu0  ;;  %v765_v43 = vadd.f32 %v2590_v16, %v663_v53  ;;  %v968_v13 = vadd.f32 %v2609_v28, %v866_v40  ;;  %v870_v16 = vadd.f32 %v2603_v35, %v768_v12  ;;  %v869_v35 = vadd.f32 %v852_v42, %v767_v10 }
 0x188   : > { %v2629_v47 = vpop.f32.mrf.mxu1 }
 0x189   : > { %v1038_v50 = vpop.f32.mrf.mxu0  ;;  %v867_v1 = vadd.f32 %v2600_v31, %v765_v43  ;;  %v1071_v17 = vadd.f32 %v2619_v46, %v968_v13  ;;  %v972_v20 = vadd.f32 %v2613_v36, %v870_v16 }
 0x18a   : > { %v1140_v54 = vpop.f32.mrf.mxu1  ;;  %v1069_v7 = vadd.f32 %v1038_v50, %v966_v14  ;;  %v3320_v24 = vld [vmem:[#allocation6_spill] sm:$0xff] }
 0x18b   : > { %v2620_v56 = vpop.f32.mrf.mxu0  ;;  %v969_v27 = vadd.f32 %v2610_v32, %v867_v1  ;;  %v1173_v28 = vadd.f32 %v2629_v47, %v1071_v17  ;;  %v970_v33 = vadd.f32 %v3320_v24, %v868_v21 }
 0x18c   : > { %v2630_v61 = vpop.f32.mrf.mxu1  ;;  %v1171_v30 = vadd.f32 %v1140_v54, %v1069_v7  ;;  %v3321_v44 = vld [vmem:[#allocation7_spill] sm:$0xff] }
 0x18d   : > { %v1041_v38 = vpop.f32.mrf.mxu0  ;;  %v1072_v29 = vadd.f32 %v2620_v56, %v969_v27  ;;  %v973_v45 = vadd.f32 %v3321_v44, %v871_v23 }
 0x18e   : > { %v1143_v5 = vpop.f32.mrf.mxu1  ;;  %v1070_v31 = vadd.f32 %v1041_v38, %v967_v18  ;;  %v3322_v50 = vld [vmem:[#allocation8_spill] sm:$0xff] }
 0x18f   : > { %v2623_v62 = vpop.f32.mrf.mxu0  ;;  %v1174_v36 = vadd.f32 %v2630_v61, %v1072_v29  ;;  %v971_v51 = vadd.f32 %v3322_v50, %v869_v35  ;;  %v1350_v29 = vld [vmem:[#allocation3] sm:$0xff] }
 0x190   : > { %v2633_v9 = vpop.f32.mrf.mxu1  ;;  %v1075_v34 = vadd.f32 %v2623_v62, %v972_v20  ;;  %v1172_v38 = vadd.f32 %v1143_v5, %v1070_v31 }
 0x191   : > { %v1054_v4 = vpop.f32.mrf.mxu0 }
 0x192   : > { %v1156_v39 = vpop.f32.mrf.mxu1  ;;  %v1073_v46 = vadd.f32 %v1054_v4, %v970_v33  ;;  %v1177_v52 = vadd.f32 %v2633_v9, %v1075_v34 }
 0x193   : > { %v2624_v57 = vpop.f32.mrf.mxu0 }
 0x194   : > { %v1076_v53 = vadd.f32 %v2624_v57, %v973_v45  ;;  %v2634_v55 = vpop.f32.mrf.mxu1  ;;  %v1175_v61 = vadd.f32 %v1156_v39, %v1073_v46  ;;  %v3323_v39 = vld [vmem:[#allocation4_spill] sm:$0xff]  ;;  %v2434_v45 = vld [vmem:[%s3308_s4 + $0x10] sm:$0xf]  ;;  %v2439_v46 = vld [vmem:[%s3308_s4 + $0x14] sm:$0xf] }
 0x195   : > { %v1057_v0 = vpop.f32.mrf.mxu0 }
 0x196   : > { %v1074_v11 = vadd.f32 %v1057_v0, %v971_v51  ;;  %v1178_v2 = vadd.f32 %v2634_v55, %v1076_v53  ;;  %v1159_v3 = vpop.f32.mrf.mxu1 }
 0x197   : > { %v2639_v25 = vpop.f32.mrf.mxu0 }
 0x198   : > { %v1275_v32 = vadd.f32 %v2639_v25, %v1173_v28  ;;  %v1176_v5 = vadd.f32 %v1159_v3, %v1074_v11  ;;  %v1363_v28 = vld [vmem:[#allocation3 + $0x1] sm:$0xff]  ;;  %v1871_v3 = vsel %vm1389_vm5, %v2439_v46, 0 }
 0x199   : > { %v1242_v26 = vpop.f32.mrf.mxu0 }
 0x19a   : > { %v1289_v40 = vmul.f32 %v3111_v22, %v1275_v32  ;;  %v1273_v43 = vadd.f32 %v1242_v26, %v1171_v30 }
 0x19b   : > { %v2640_v47 = vpop.f32.mrf.mxu0 }
 0x19c   : > { %v1303_v48 = vadd.f32 %v2414_v37, %v1289_v40  ;;  %v1287_v49 = vmul.f32 %v3111_v22, %v1273_v43  ;;  %v1276_v42 = vadd.f32 %v2640_v47, %v1174_v36  ;;  %v1565_v40 = vsel %vm1389_vm5, %v3323_v39, 0  ;;  %v3324_v43 = vld [vmem:[#allocation5_spill] sm:$0xff] }
 0x19d   : > { %v1245_v54 = vpop.f32.mrf.mxu0  ;;  %v1667_v44 = vsel %vm1389_vm5, %v3324_v43, 0 }
 0x19e   : > { %v1311_v56 = vmax.f32 %v1303_v48, 0.0  ;;  %v1301_v58 = vadd.f32 %v2414_v37, %v1287_v49  ;;  %v1290_v59 = vmul.f32 %v3111_v22, %v1276_v42  ;;  %v1274_v60 = vadd.f32 %v1245_v54, %v1172_v38 }
 0x19f   : > { %v2643_v41 = vpop.f32.mrf.mxu0 }
 0x1a0   : > { %1342 = vst.msk [vmem:[#allocation3 + $0x31] sm:$0xff] %vm1317_vm3, %v1311_v56  ;;  %v1309_v62 = vmax.f32 %v1301_v58, 0.0  ;;  %v1304_v63 = vadd.f32 %v2414_v37, %v1290_v59  ;;  %v1288_v13 = vmul.f32 %v3111_v22, %v1274_v60  ;;  %v1279_v1 = vadd.f32 %v2643_v41, %v1177_v52  ;;  %v1538_v52 = vld [vmem:[#allocation3 + $0x2] sm:$0xff] }
 0x1a1   : > { %v1258_v12 = vpop.f32.mrf.mxu0 }
 0x1a2   : > { %1340 = vst.msk [vmem:[#allocation3 + $0x11] sm:$0xff] %vm1317_vm3, %v1309_v62  ;;  %v1312_v4 = vmax.f32 %v1304_v63, 0.0  ;;  %v1302_v14 = vadd.f32 %v2414_v37, %v1288_v13  ;;  %v1293_v15 = vmul.f32 %v3111_v22, %v1279_v1  ;;  %v1277_v17 = vadd.f32 %v1258_v12, %v1175_v61 }
 0x1a3   : > { %v2644_v6 = vpop.f32.mrf.mxu0  ;;  %v1769_v1 = vsel %vm1389_vm5, %v2434_v45, 0 }
 0x1a4   : > { %1343 = vst.msk [vmem:[#allocation3 + $0x41] sm:$0xff] %vm1317_vm3, %v1312_v4  ;;  %v1310_v19 = vmax.f32 %v1302_v14, 0.0  ;;  %v1307_v16 = vadd.f32 %v2414_v37, %v1293_v15  ;;  %v1291_v57 = vmul.f32 %v3111_v22, %v1277_v17  ;;  %v1280_v27 = vadd.f32 %v2644_v6, %v1178_v2  ;;  %v2444_v14 = vld [vmem:[%s3308_s4 + $0x18] sm:$0xf]  ;;  %v2449_v15 = vld [vmem:[%s3308_s4 + $0x1c] sm:$0xf] }
 0x1a5   : > { %v1261_v7 = vpop.f32.mrf.mxu0 }
 0x1a6   : > { %1341 = vst.msk [vmem:[#allocation3 + $0x21] sm:$0xff] %vm1317_vm3, %v1310_v19  ;;  %v1315_v8 = vmax.f32 %v1307_v16, 0.0  ;;  %v1305_v21 = vadd.f32 %v2414_v37, %v1291_v57  ;;  %v1294_v0 = vmul.f32 %v3111_v22, %v1280_v27  ;;  %v1278_v18 = vadd.f32 %v1261_v7, %v1176_v5 }
 0x1a7   : > { %v3139_v35 = vld [vmem:[#allocation3 + $0x31] sm:$0xff] }
 0x1a8   : > { %1346 = vst.msk [vmem:[#allocation3 + $0x71] sm:$0xff] %vm1317_vm3, %v1315_v8  ;;  %v1313_v9 = vmax.f32 %v1305_v21, 0.0  ;;  %v1308_v10 = vadd.f32 %v2414_v37, %v1294_v0  ;;  %v1292_v20 = vmul.f32 %v3111_v22, %v1278_v18  ;;  %v1353_v26 = vld [vmem:[#allocation3 + $0x30] sm:$0xff]  ;;  %v1974_v21 = vsel %vm1389_vm5, %v2444_v14, 0 }
 0x1a9   : > { %v3132_v23 = vld [vmem:[#allocation3 + $0x11] sm:$0xff]  ;;  %v2076_v18 = vsel %vm1389_vm5, %v2449_v15, 0 }
 0x1aa   : > { %v1351_v25 = vld [vmem:[#allocation3 + $0x10] sm:$0xff]  ;;  %1344 = vst.msk [vmem:[#allocation3 + $0x51] sm:$0xff] %vm1317_vm3, %v1313_v9  ;;  %v1316_v30 = vmax.f32 %v1308_v10, 0.0  ;;  %v1306_v31 = vadd.f32 %v2414_v37, %v1292_v20  ;;  %v1371_v32 = vpack.c.bf16 %v3132_v23, %v1363_v28 }
 0x1ab   : > { %v1358_v24 = vpack.c.bf16 %v1351_v25, %v1350_v29  ;;  %v3164_v47 = vld [vmem:[#allocation3 + $0x41] sm:$0xff]  ;;  %v1539_v53 = vld [vmem:[#allocation3 + $0x12] sm:$0xff] }
 0x1ac   : > { %1347 = vst.msk [vmem:[#allocation3 + $0x81] sm:$0xff] %vm1317_vm3, %v1316_v30  ;;  %v1314_v33 = vmax.f32 %v1306_v31, 0.0  ;;  %2647 = vmatprep.mubr.msk.bf16.mxu1 %vm1317_vm3, %v1371_v32  ;;  %v1354_v48 = vld [vmem:[#allocation3 + $0x40] sm:$0xff]  ;;  %v1546_v60 = vpack.c.bf16 %v1539_v53, %v1538_v52  ;;  %v1541_v62 = vld [vmem:[#allocation3 + $0x32] sm:$0xff]  ;;  %v1751_v7 = vpack.c.bf16 %v3164_v47, %v3139_v35 }
 0x1ad   : > { %2657 = vmatprep.mubr.msk.bf16.mxu0 %vm1317_vm3, %v1358_v24  ;;  %v3141_v22 = vld [vmem:[#allocation3 + $0x21] sm:$0xff]  ;;  %v1649_v13 = vpack.c.bf16 %v1354_v48, %v1353_v26  ;;  %v1954_v30 = vld [vmem:[#allocation3 + $0x90] sm:$0xff] }
 0x1ae   : > { %v1352_v34 = vld [vmem:[#allocation3 + $0x20] sm:$0xff]  ;;  %1345 = vst.msk [vmem:[#allocation3 + $0x61] sm:$0xff] %vm1317_vm3, %v1314_v33  ;;  %v3146_v37 = vpack.c.bf16 %v3139_v35, %v3141_v22  ;;  %v1750_v57 = vpack.c.bf16 %v3141_v22, %v3132_v23  ;;  %v2056_v31 = vld [vmem:[#allocation3 + $0x91] sm:$0xff] }
 0x1af   : > { %v3148_v36 = vpack.c.bf16 %v1353_v26, %v1352_v34  ;;  %v3180_v51 = vld [vmem:[#allocation3 + $0x71] sm:$0xff]  ;;  %v1648_v61 = vpack.c.bf16 %v1352_v34, %v1351_v25  ;;  %v1540_v11 = vld [vmem:[#allocation3 + $0x22] sm:$0xff] }
 0x1b0   : > { %2648 = vmatmul.mubr.msk.bf16.vlgmr.msra.gmra.mxu1 %vm1317_vm3, %v3146_v37  ;;  %v1357_v56 = vld [vmem:[#allocation3 + $0x70] sm:$0xff]  ;;  %v1547_v63 = vpack.c.bf16 %v1541_v62, %v1540_v11  ;;  %v1542_v2 = vld [vmem:[#allocation3 + $0x42] sm:$0xff]  ;;  %v1852_v27 = vpack.c.bf16 %v1540_v11, %v1539_v53 }
 0x1b1   : > { %2658 = vmatmul.mubr.msk.bf16.vlgmr.msra.gmra.mxu0 %vm1317_vm3, %v3148_v36  ;;  %2666 = vmatpush3.bf16.msra.mxu1 %v1565_v40  ;;  %v3166_v38 = vld [vmem:[#allocation3 + $0x51] sm:$0xff]  ;;  %v1853_v8 = vpack.c.bf16 %v1542_v2, %v1541_v62  ;;  %v2454_v29 = vld [vmem:[%s3308_s4 + $0x20] sm:$0xf] }
 0x1b2   : > { %v1355_v49 = vld [vmem:[#allocation3 + $0x50] sm:$0xff]  ;;  %2676 = vmatpush3.bf16.msra.mxu0 %v1667_v44  ;;  %v3170_v42 = vpack.c.bf16 %v3166_v38, %v3164_v47  ;;  %2748 = vmatprep.subr.msk.bf16.mxu1 %vm1389_vm5, %v2434_v45  ;;  %v2178_v25 = vsel %vm1389_vm5, %v2454_v29, 0 }
 0x1b3   : > { %v3172_v50 = vpack.c.bf16 %v1355_v49, %v1354_v48  ;;  %2749 = vmatprep.subr.msk.bf16.mxu0 %vm1389_vm5, %v2439_v46  ;;  %v1543_v41 = vld [vmem:[#allocation3 + $0x52] sm:$0xff]  ;;  %v1647_v5 = vld [vmem:[#allocation3 + $0x80] sm:$0xff] }
 0x1b4   : > { %2651 = vmatprep.mubr.msk.bf16.mxu1 %vm1317_vm3, %v3170_v42  ;;  %v1548_v12 = vpack.c.bf16 %v1543_v41, %v1542_v2  ;;  %v1545_v6 = vld [vmem:[#allocation3 + $0x72] sm:$0xff]  ;;  %v1651_v16 = vpack.c.bf16 %v1647_v5, %v1357_v56  ;;  %v1749_v9 = vld [vmem:[#allocation3 + $0x81] sm:$0xff]  ;;  %v1958_v32 = vpack.c.bf16 %v1954_v30, %v1647_v5 }
 0x1b5   : > { %2661 = vmatprep.mubr.msk.bf16.mxu0 %vm1317_vm3, %v3172_v50  ;;  %v1369_v54 = vld [vmem:[#allocation3 + $0x61] sm:$0xff]  ;;  %v1753_v20 = vpack.c.bf16 %v1749_v9, %v3180_v51  ;;  %v2060_v24 = vpack.c.bf16 %v2056_v31, %v1749_v9  ;;  %v2158_v33 = vld [vmem:[#allocation3 + $0x92] sm:$0xff] }
 0x1b6   : > { %v1356_v55 = vld [vmem:[#allocation3 + $0x60] sm:$0xff]  ;;  %v3183_v58 = vpack.c.bf16 %v3180_v51, %v1369_v54  ;;  %v1752_v0 = vpack.c.bf16 %v1369_v54, %v3166_v38 }
 0x1b7   : > { %v3185_v59 = vpack.c.bf16 %v1357_v56, %v1356_v55  ;;  %v1650_v4 = vpack.c.bf16 %v1356_v55, %v1355_v49  ;;  %v1544_v17 = vld [vmem:[#allocation3 + $0x62] sm:$0xff] }
 0x1b8   : > { %2652 = vmatmul.mubr.msk.bf16.gmra.mxu1 %vm1317_vm3, %v3183_v58  ;;  %v1549_v19 = vpack.c.bf16 %v1545_v6, %v1544_v17  ;;  %v1854_v28 = vpack.c.bf16 %v1544_v17, %v1543_v41  ;;  %v1851_v10 = vld [vmem:[#allocation3 + $0x82] sm:$0xff] }
 0x1b9   : > { %2662 = vmatmul.mubr.msk.bf16.gmra.mxu0 %vm1317_vm3, %v3185_v59  ;;  %2667 = vmatprep.mubr.msk.bf16.mxu1 %vm1317_vm3, %v1546_v60  ;;  %v1855_v23 = vpack.c.bf16 %v1851_v10, %v1545_v6  ;;  %v2162_v35 = vpack.c.bf16 %v2158_v33, %v1851_v10 }
 0x1ba   : > { %2677 = vmatprep.mubr.msk.bf16.mxu0 %vm1317_vm3, %v1648_v61 }
 0x1c0   : > { %2668 = vmatmul.mubr.msk.bf16.vlgmr.msra.gmra.mxu1 %vm1317_vm3, %v1547_v63 }
 0x1c1   : > { %2678 = vmatmul.mubr.msk.bf16.vlgmr.msra.gmra.mxu0 %vm1317_vm3, %v1649_v13  ;;  %2686 = vmatpush3.bf16.msra.mxu1 %v1769_v1 }
 0x1c2   : > { %2671 = vmatprep.mubr.msk.bf16.mxu1 %vm1317_vm3, %v1548_v12  ;;  %2681 = vmatprep.mubr.msk.bf16.mxu0 %vm1317_vm3, %v1650_v4 }
 0x1c3   : > { %2696 = vmatpush3.bf16.msra.mxu0 %v1871_v3  ;;  %2750 = vmatprep.subr.msk.bf16.mxu1 %vm1389_vm5, %v2444_v14 }
 0x1c4   : > { %2751 = vmatprep.subr.msk.bf16.mxu0 %vm1389_vm5, %v2449_v15 }
 0x1c8   : > { %2672 = vmatmul.mubr.msk.bf16.gmra.mxu1 %vm1317_vm3, %v1549_v19 }
 0x1c9   : > { %2682 = vmatmul.mubr.msk.bf16.gmra.mxu0 %vm1317_vm3, %v1651_v16  ;;  %2687 = vmatprep.mubr.msk.bf16.mxu1 %vm1317_vm3, %v1750_v57 }
 0x1ca   : > { %2697 = vmatprep.mubr.msk.bf16.mxu0 %vm1317_vm3, %v1852_v27 }
 0x1d0   : > { %2688 = vmatmul.mubr.msk.bf16.vlgmr.msra.gmra.mxu1 %vm1317_vm3, %v1751_v7 }
 0x1d1   : > { %2698 = vmatmul.mubr.msk.bf16.vlgmr.msra.gmra.mxu0 %vm1317_vm3, %v1853_v8  ;;  %2706 = vmatpush3.bf16.msra.mxu1 %v1974_v21 }
 0x1d2   : > { %2691 = vmatprep.mubr.msk.bf16.mxu1 %vm1317_vm3, %v1752_v0  ;;  %2701 = vmatprep.mubr.msk.bf16.mxu0 %vm1317_vm3, %v1854_v28 }
 0x1d3   : > { %2716 = vmatpush3.bf16.msra.mxu0 %v2076_v18  ;;  %2752 = vmatprep.subr.msk.bf16.mxu1 %vm1389_vm5, %v2454_v29 }
 0x1d8   : > { %2692 = vmatmul.mubr.msk.bf16.gmra.mxu1 %vm1317_vm3, %v1753_v20 }
 0x1d9   : > { %2702 = vmatmul.mubr.msk.bf16.gmra.mxu0 %vm1317_vm3, %v1855_v23  ;;  %2707 = vmatprep.mubr.msk.bf16.mxu1 %vm1317_vm3, %v3148_v36 }
 0x1da   : > { %2717 = vmatprep.mubr.msk.bf16.mxu0 %vm1317_vm3, %v3146_v37 }
 0x1e0   : > { %2708 = vmatmul.mubr.msk.bf16.vlgmr.msra.gmra.mxu1 %vm1317_vm3, %v3172_v50 }
 0x1e1   : > { %2718 = vmatmul.mubr.msk.bf16.vlgmr.msra.gmra.mxu0 %vm1317_vm3, %v3170_v42  ;;  %2726 = vmatpush3.bf16.msra.mxu1 %v2178_v25 }
 0x1e2   : > { %2711 = vmatprep.mubr.msk.bf16.mxu1 %vm1317_vm3, %v3185_v59  ;;  %2721 = vmatprep.mubr.msk.bf16.mxu0 %vm1317_vm3, %v3183_v58 }
 0x1e8   : > { %2712 = vmatmul.mubr.msk.bf16.gmra.mxu1 %vm1317_vm3, %v1958_v32 }
 0x1e9   : > { %2722 = vmatmul.mubr.msk.bf16.gmra.mxu0 %vm1317_vm3, %v2060_v24  ;;  %2727 = vmatprep.mubr.msk.bf16.mxu1 %vm1317_vm3, %v1547_v63 }
 0x1f0   : > { %2728 = vmatmul.mubr.msk.bf16.vlgmr.msra.gmra.mxu1 %vm1317_vm3, %v1548_v12 }
 0x1f1   : > { %2731 = vmatprep.mubr.msk.bf16.mxu1 %vm1317_vm3, %v1549_v19 }
 0x1f8   : > { %2732 = vmatmul.mubr.msk.bf16.gmra.mxu1 %vm1317_vm3, %v2162_v35 }
 0x270   : > { %v2649_v22 = vpop.f32.mrf.mxu1 }
 0x271   : > { %v2659_v34 = vpop.f32.mrf.mxu0 }
 0x272   : > { %v1427_v26 = vpop.f32.mrf.mxu1  ;;  %v1516_v7 = vadd.f32 %v2659_v34, %v2649_v22 }
 0x273   : > { %v1507_v37 = vpop.f32.mrf.mxu0 }
 0x274   : > { %v2650_v36 = vpop.f32.mrf.mxu1  ;;  %v1508_v0 = vadd.f32 %v1507_v37, %v1427_v26 }
 0x275   : > { %v2660_v39 = vpop.f32.mrf.mxu0 }
 0x276   : > { %v1430_v40 = vpop.f32.mrf.mxu1  ;;  %v1519_v9 = vadd.f32 %v2660_v39, %v2650_v36 }
 0x277   : > { %v1510_v43 = vpop.f32.mrf.mxu0 }
 0x278   : > { %v2653_v44 = vpop.f32.mrf.mxu1  ;;  %v1511_v23 = vadd.f32 %v1510_v43, %v1430_v40 }
 0x279   : > { %v2663_v45 = vpop.f32.mrf.mxu0 }
 0x27a   : > { %v1443_v46 = vpop.f32.mrf.mxu1  ;;  %v1532_v32 = vadd.f32 %v2663_v45, %v2653_v44 }
 0x27b   : > { %v1523_v47 = vpop.f32.mrf.mxu0 }
 0x27c   : > { %v2654_v38 = vpop.f32.mrf.mxu1  ;;  %v1524_v22 = vadd.f32 %v1523_v47, %v1443_v46 }
 0x27d   : > { %v2664_v48 = vpop.f32.mrf.mxu0 }
 0x27e   : > { %v3248_v49 = vpop.f32.mrf.mxu1 }
 0x27f   : > { %v1526_v42 = vpop.f32.mrf.mxu0 }
 0x280   : > { %v2669_v50 = vpop.f32.mrf.mxu1  ;;  %v1527_v43 = vadd.f32 %v1526_v42, %v3248_v49 }
 0x281   : > { %v2679_v51 = vpop.f32.mrf.mxu0  ;;  %v1634_v18 = vadd.f32 %v2669_v50, %v1516_v7  ;;  %v1535_v50 = vadd.f32 %v2664_v48, %v2654_v38 }
 0x282   : > { %v1601_v52 = vpop.f32.mrf.mxu1 }
 0x283   : > { %v1703_v53 = vpop.f32.mrf.mxu0  ;;  %v1632_v10 = vadd.f32 %v1601_v52, %v1508_v0  ;;  %v1736_v25 = vadd.f32 %v2679_v51, %v1634_v18 }
 0x284   : > { %v2670_v54 = vpop.f32.mrf.mxu1 }
 0x285   : > { %v2680_v55 = vpop.f32.mrf.mxu0  ;;  %v1635_v30 = vadd.f32 %v2670_v54, %v1519_v9  ;;  %v1734_v33 = vadd.f32 %v1703_v53, %v1632_v10 }
 0x286   : > { %v1604_v56 = vpop.f32.mrf.mxu1 }
 0x287   : > { %v1706_v58 = vpop.f32.mrf.mxu0  ;;  %v1633_v35 = vadd.f32 %v1604_v56, %v1511_v23 }
 0x288   : > { %v2673_v59 = vpop.f32.mrf.mxu1 }
 0x289   : > { %v2683_v60 = vpop.f32.mrf.mxu0  ;;  %v1638_v34 = vadd.f32 %v2673_v59, %v1532_v32  ;;  %v1735_v39 = vadd.f32 %v1706_v58, %v1633_v35 }
 0x28a   : > { %v1617_v61 = vpop.f32.mrf.mxu1 }
 0x28b   : > { %v1719_v11 = vpop.f32.mrf.mxu0  ;;  %v1636_v7 = vadd.f32 %v1617_v61, %v1524_v22  ;;  %v1740_v51 = vadd.f32 %v2683_v60, %v1638_v34 }
 0x28c   : > { %v2674_v41 = vpop.f32.mrf.mxu1 }
 0x28d   : > { %v2684_v62 = vpop.f32.mrf.mxu0  ;;  %v1639_v44 = vadd.f32 %v2674_v41, %v1535_v50  ;;  %v1738_v47 = vadd.f32 %v1719_v11, %v1636_v7  ;;  %v3263_v11 = vld [vmem:[%s3309_s5] ss:$0 sm:$0xff] }
 0x28e   : > { %v1620_v63 = vpop.f32.mrf.mxu1 }
 0x28f   : > { %v3250_v13 = vpop.f32.mrf.mxu0  ;;  %v1637_v59 = vadd.f32 %v1620_v63, %v1527_v43  ;;  %v1741_v48 = vadd.f32 %v2684_v62, %v1639_v44 }
 0x290   : > { %v2689_v1 = vpop.f32.mrf.mxu1 }
 0x291   : > { %v2699_v2 = vpop.f32.mrf.mxu0  ;;  %v1739_v42 = vadd.f32 %v3250_v13, %v1637_v59 }
 0x292   : > { %v1805_v12 = vpop.f32.mrf.mxu1 }
 0x293   : > { %v1907_v3 = vpop.f32.mrf.mxu0  ;;  %v1836_v26 = vadd.f32 %v1805_v12, %v1734_v33 }
 0x294   : > { %v2690_v4 = vpop.f32.mrf.mxu1 }
 0x295   : > { %v2700_v14 = vpop.f32.mrf.mxu0  ;;  %v1938_v53 = vadd.f32 %v1907_v3, %v1836_v26 }
 0x296   : > { %v1808_v15 = vpop.f32.mrf.mxu1 }
 0x297   : > { %v1910_v17 = vpop.f32.mrf.mxu0  ;;  %v1837_v54 = vadd.f32 %v1808_v15, %v1735_v39 }
 0x298   : > { %v2693_v5 = vpop.f32.mrf.mxu1 }
 0x299   : > { %v2703_v6 = vpop.f32.mrf.mxu0 }
 0x29a   : > { %v1821_v19 = vpop.f32.mrf.mxu1 }
 0x29b   : > { %v3252_v16 = vpop.f32.mrf.mxu0  ;;  %v1840_v61 = vadd.f32 %v1821_v19, %v1738_v47 }
 0x29c   : > { %3325 = vst [vmem:[#allocation6_spill] sm:$0xff] %v3252_v16  ;;  %v2694_v57 = vpop.f32.mrf.mxu1 }
 0x29d   : > { %v3254_v27 = vpop.f32.mrf.mxu0  ;;  %v1843_v41 = vadd.f32 %v2694_v57, %v1741_v48 }
 0x29e   : > { %3326 = vst [vmem:[#allocation7_spill] sm:$0xff] %v3254_v27  ;;  %v1824_v8 = vpop.f32.mrf.mxu1  ;;  %v1838_v27 = vadd.f32 %v2689_v1, %v1736_v25 }
 0x29f   : > { %v3256_v21 = vpop.f32.mrf.mxu0 }
 0x2a0   : > { %3327 = vst [vmem:[#allocation8_spill] sm:$0xff] %v3256_v21  ;;  %v2709_v28 = vpop.f32.mrf.mxu1  ;;  %v1737_v21 = vadd.f32 %v2680_v55, %v1635_v30  ;;  %v1940_v52 = vadd.f32 %v2699_v2, %v1838_v27  ;;  %v1842_v55 = vadd.f32 %v2693_v5, %v1740_v51  ;;  %v1939_v2 = vadd.f32 %v1910_v17, %v1837_v54 }
 0x2a1   : > { %v2719_v29 = vpop.f32.mrf.mxu0  ;;  %v1841_v17 = vadd.f32 %v1824_v8, %v1739_v42 }
 0x2a2   : > { %v2010_v20 = vpop.f32.mrf.mxu1  ;;  %v1839_v40 = vadd.f32 %v2690_v4, %v1737_v21  ;;  %v2043_v56 = vadd.f32 %v2709_v28, %v1940_v52  ;;  %v1944_v60 = vadd.f32 %v2703_v6, %v1842_v55  ;;  %v2460_v21 = vld [vmem:[%s3310_s6] ss:$0 sm:$0xff] }
 0x2a3   : > { %v2112_v31 = vpop.f32.mrf.mxu0  ;;  %v2041_v38 = vadd.f32 %v2010_v20, %v1938_v53  ;;  %v3328_v15 = vld [vmem:[#allocation6_spill] sm:$0xff] }
 0x2a4   : > { %v2710_v24 = vpop.f32.mrf.mxu1  ;;  %v1941_v12 = vadd.f32 %v2700_v14, %v1839_v40  ;;  %v2145_v4 = vadd.f32 %v2719_v29, %v2043_v56  ;;  %v1942_v5 = vadd.f32 %v3328_v15, %v1840_v61 }
 0x2a5   : > { %v2720_v37 = vpop.f32.mrf.mxu0  ;;  %v2143_v3 = vadd.f32 %v2112_v31, %v2041_v38  ;;  %v3329_v28 = vld [vmem:[#allocation7_spill] sm:$0xff] }
 0x2a6   : > { %v2013_v16 = vpop.f32.mrf.mxu1  ;;  %v2044_v27 = vadd.f32 %v2710_v24, %v1941_v12  ;;  %v1945_v29 = vadd.f32 %v3329_v28, %v1843_v41 }
 0x2a7   : > { %v2115_v46 = vpop.f32.mrf.mxu0  ;;  %v2042_v14 = vadd.f32 %v2013_v16, %v1939_v2  ;;  %v3330_v25 = vld [vmem:[#allocation8_spill] sm:$0xff] }
 0x2a8   : > { %v2713_v36 = vpop.f32.mrf.mxu1  ;;  %v2146_v6 = vadd.f32 %v2720_v37, %v2044_v27  ;;  %v1943_v30 = vadd.f32 %v3330_v25, %v1841_v17 }
 0x2a9   : > { %v2723_v49 = vpop.f32.mrf.mxu0  ;;  %v2047_v19 = vadd.f32 %v2713_v36, %v1944_v60  ;;  %v2144_v10 = vadd.f32 %v2115_v46, %v2042_v14 }
 0x2aa   : > { %v2026_v45 = vpop.f32.mrf.mxu1 }
 0x2ab   : > { %v2128_v57 = vpop.f32.mrf.mxu0  ;;  %v2045_v9 = vadd.f32 %v2026_v45, %v1942_v5  ;;  %v2149_v31 = vadd.f32 %v2723_v49, %v2047_v19 }
 0x2ac   : > { %v2714_v1 = vpop.f32.mrf.mxu1 }
 0x2ad   : > { %v2048_v32 = vadd.f32 %v2714_v1, %v1945_v29  ;;  %v2724_v33 = vpop.f32.mrf.mxu0  ;;  %v2147_v37 = vadd.f32 %v2128_v57, %v2045_v9 }
 0x2ae   : > { %v2029_v58 = vpop.f32.mrf.mxu1 }
 0x2af   : > { %v2046_v50 = vadd.f32 %v2029_v58, %v1943_v30  ;;  %v2150_v43 = vadd.f32 %v2724_v33, %v2048_v32  ;;  %v2131_v44 = vpop.f32.mrf.mxu0 }
 0x2b0   : > { %v2729_v63 = vpop.f32.mrf.mxu1 }
 0x2b1   : > { %v2247_v62 = vadd.f32 %v2729_v63, %v2145_v4  ;;  %v2148_v46 = vadd.f32 %v2131_v44, %v2046_v50 }
 0x2b2   : > { %v2214_v13 = vpop.f32.mrf.mxu1 }
 0x2b3   : > { %v2261_v0 = vmul.f32 %v3263_v11, %v2247_v62  ;;  %v2245_v18 = vadd.f32 %v2214_v13, %v2143_v3 }
 0x2b4   : > { %v2730_v16 = vpop.f32.mrf.mxu1 }
 0x2b5   : > { %v2275_v20 = vadd.f32 %v2460_v21, %v2261_v0  ;;  %v2259_v8 = vmul.f32 %v3263_v11, %v2245_v18  ;;  %v2248_v23 = vadd.f32 %v2730_v16, %v2146_v6 }
 0x2b6   : > { %v2217_v24 = vpop.f32.mrf.mxu1 }
 0x2b7   : > { %v2283_v35 = vmax.f32 %v2275_v20, 0.0  ;;  %v2273_v22 = vadd.f32 %v2460_v21, %v2259_v8  ;;  %v2262_v34 = vmul.f32 %v3263_v11, %v2248_v23  ;;  %v2246_v26 = vadd.f32 %v2217_v24, %v2144_v10 }
 0x2b8   : > { %v2733_v7 = vpop.f32.mrf.mxu1 }
 0x2b9   : > { %2291 = vst.msk [vmem:[%s3277_s25 + $0x10] sm:$0xff] %vm1317_vm3, %v2283_v35  ;;  %v2281_v36 = vmax.f32 %v2273_v22, 0.0  ;;  %v2276_v39 = vadd.f32 %v2460_v21, %v2262_v34  ;;  %v2260_v52 = vmul.f32 %v3263_v11, %v2246_v26  ;;  %v2251_v40 = vadd.f32 %v2733_v7, %v2149_v31 }
 0x2ba   : > { %v2230_v51 = vpop.f32.mrf.mxu1 }
 0x2bb   : > { %2289 = vst.msk [vmem:[%s3277_s25] sm:$0xff] %vm1317_vm3, %v2281_v36  ;;  %v2284_v45 = vmax.f32 %v2276_v39, 0.0  ;;  %v2274_v53 = vadd.f32 %v2460_v21, %v2260_v52  ;;  %v2265_v54 = vmul.f32 %v3263_v11, %v2251_v40  ;;  %v2249_v56 = vadd.f32 %v2230_v51, %v2147_v37 }
 0x2bc   : > { %v2734_v47 = vpop.f32.mrf.mxu1 }
 0x2bd   : > { %2292 = vst.msk [vmem:[%s3277_s25 + $0x18] sm:$0xff] %vm1317_vm3, %v2284_v45  ;;  %v2282_v59 = vmax.f32 %v2274_v53, 0.0  ;;  %v2279_v55 = vadd.f32 %v2460_v21, %v2265_v54  ;;  %v2263_v1 = vmul.f32 %v3263_v11, %v2249_v56  ;;  %v2252_v12 = vadd.f32 %v2734_v47, %v2150_v43 }
 0x2be   : > { %v2233_v38 = vpop.f32.mrf.mxu1 }
 0x2bf   : > { %2290 = vst.msk [vmem:[%s3277_s25 + $0x8] sm:$0xff] %vm1317_vm3, %v2282_v59  ;;  %v2287_v48 = vmax.f32 %v2279_v55, 0.0  ;;  %v2277_v61 = vadd.f32 %v2460_v21, %v2263_v1  ;;  %v2266_v58 = vmul.f32 %v3263_v11, %v2252_v12  ;;  %v2250_v2 = vadd.f32 %v2233_v38, %v2148_v46 }
 0x2c1   : > { %2295 = vst.msk [vmem:[%s3277_s25 + $0x30] sm:$0xff] %vm1317_vm3, %v2287_v48  ;;  %v2285_v4 = vmax.f32 %v2277_v61, 0.0  ;;  %v2280_v27 = vadd.f32 %v2460_v21, %v2266_v58  ;;  %v2264_v49 = vmul.f32 %v3263_v11, %v2250_v2 }
 0x2c3   : > { %2293 = vst.msk [vmem:[%s3277_s25 + $0x20] sm:$0xff] %vm1317_vm3, %v2285_v4  ;;  %v2288_v42 = vmax.f32 %v2280_v27, 0.0  ;;  %v2278_v60 = vadd.f32 %v2460_v21, %v2264_v49 }
 0x2c5   : > { %2296 = vst.msk [vmem:[%s3277_s25 + $0x38] sm:$0xff] %vm1317_vm3, %v2288_v42  ;;  %v2286_v41 = vmax.f32 %v2278_v60, 0.0 }
 0x2c7   : > { %2294 = vst.msk [vmem:[%s3277_s25 + $0x28] sm:$0xff] %vm1317_vm3, %v2286_v41 }
 0x2c8 PF: > { %s17_s24 = sadd.s32 1, %s2769_s24  }
 0x2c9   : > { %p14_p4 = scmp.ge.s32.totalorder %s17_s24, 4  }
 0x2cb   :  { %16 = sbr.rel (!%p14_p4) target bundleno = 1 (0x1), region = 99 }

</bundles_post_ra>
